<compile_context>
chip_gen: v7x
topology: tpu7x:2x2x1
jax: 0.10.0
libtpu: 0.0.40
codegen_flags: <defaults>
</compile_context>

<pallas_src>
import jax
import jax.numpy as jnp
from jax.experimental import pallas as pl
from jax.experimental.pallas import tpu as pltpu

_EPS = 1e-5
_VMEM_BUDGET_CACHE = None


def _vmem_budget():
    """~3/4 of physical VMEM: 96 MiB on v5e/v6e (128 MiB), 48 MiB on v7x
    (64 MiB).  Conservative 48 MiB fallback if the query is unavailable."""
    global _VMEM_BUDGET_CACHE
    if _VMEM_BUDGET_CACHE is None:
        cap = 64 << 20
        try:
            info = pltpu.get_tpu_info()
            cap = int(getattr(info, "vmem_capacity_bytes", cap)) or cap
        except Exception:
            pass
        _VMEM_BUDGET_CACHE = int(min(cap * 3 // 4, 112 << 20))
    return _VMEM_BUDGET_CACHE


def _pick_m_tile(m, k_dim, c_dim, vmem_budget):
    """Lane-dim (M) tile: a multiple of 128 that divides M, sized so the
    double-buffered per-step working set stays well inside the VMEM budget."""
    if m % 128 != 0:
        # TODO(synk): mask-tail tiling for very large M that is not a multiple
        # of 128 (cannot happen at power-of-two spatial sizes with even batch).
        return m
    bytes_per_col = 2 * k_dim + 2 * c_dim + 4 * c_dim   # bf16 A + bf16 Y + fp32 acc
    cap = (vmem_budget // 2) // max(1, 2 * bytes_per_col)
    cap = max(128, (cap // 128) * 128)
    tm = max(128, min(m, cap, 16384))
    while m % tm != 0:
        tm -= 128
    return tm


# ----------------------------- Pallas kernels ------------------------------

def _gemm_kernel(a_ref, w_ref, o_ref):
    """Single-block lane-dense GEMM (layer 1): (N, K) @ (K, 16*C1) -> bf16."""
    o_ref[...] = jnp.dot(a_ref[...], w_ref[...],
                         preferred_element_type=jnp.float32).astype(o_ref.dtype)


def _ggemm_stats_kernel(w_ref, a_ref, y_ref, s_ref, ss_ref):
    """Grouped transposed GEMM + incremental per-channel BatchNorm sums.

    grid = (M/tm, P): axis 0 (M tiles) is "parallel" (megacore), axis 1 is the
    4 sub-pixel parity groups ("arbitrary", inner).  Per step:
        y = W_p (C, K) @ A_p (K, tm)    bf16 in, fp32 accumulate, bf16 store
    and the channel sum / sum-of-squares are accumulated right after the GEMM
    into tiny per-M-tile fp32 outputs that stay VMEM-resident across the
    parity axis — no full-layer resident block, no serial multi-pass epilogue.
    """
    p = pl.program_id(1)
    y = jnp.dot(w_ref[0], a_ref[0], preferred_element_type=jnp.float32)  # (C, tm)
    y_ref[0] = y.astype(y_ref.dtype)
    s = jnp.sum(y, axis=1, keepdims=True)        # (C, 1)
    ss = jnp.sum(y * y, axis=1, keepdims=True)   # (C, 1)

    @pl.when(p == 0)
    def _():
        s_ref[0] = s
        ss_ref[0] = ss

    @pl.when(p > 0)
    def _():
        s_ref[0] = s_ref[0] + s
        ss_ref[0] = ss_ref[0] + ss


def _ggemm_tanh_kernel(w_ref, a_ref, o_ref):
    """Grouped transposed GEMM + tanh epilogue (final layer, no BatchNorm)."""
    o_ref[0] = jnp.tanh(jnp.dot(w_ref[0], a_ref[0],
                                preferred_element_type=jnp.float32))


# ----------------------------- Pallas wrappers ------------------------------

def lane_dense_gemm(a, w):
    """(N, K) @ (K, Cflat) -> (N, Cflat) bf16, single block.  Layer 1 is tiny,
    but lane dim Cflat = 16*C1 >= 256 keeps stores unmasked / MXU cols full."""
    n, k = a.shape
    cflat = w.shape[1]
    return pl.pallas_call(
        _gemm_kernel,
        out_shape=jax.ShapeDtypeStruct((n, cflat), jnp.bfloat16),
        grid_spec=pltpu.PrefetchScalarGridSpec(
            num_scalar_prefetch=0,
            grid=(1,),
            in_specs=[pl.BlockSpec((n, k), lambda i: (0, 0)),
                      pl.BlockSpec((k, cflat), lambda i: (0, 0))],
            out_specs=pl.BlockSpec((n, cflat), lambda i: (0, 0))),
        compiler_params=pltpu.CompilerParams(
            dimension_semantics=("arbitrary",),
            vmem_limit_bytes=_vmem_budget()),
    )(a.astype(jnp.bfloat16), w.astype(jnp.bfloat16))


def grouped_matmul_stats(w_stack, a_stack):
    """w_stack (P,C,K), a_stack (P,K,M) bf16 ->
       y (P,C,M) bf16 raw GEMM output + per-M-tile channel sum / sumsq (fp32)."""
    P, C, K = w_stack.shape
    M = a_stack.shape[2]
    budget = _vmem_budget()
    tm = _pick_m_tile(M, K, C, budget)
    nmt = M // tm
    return pl.pallas_call(
        _ggemm_stats_kernel,
        out_shape=(jax.ShapeDtypeStruct((P, C, M), jnp.bfloat16),
                   jax.ShapeDtypeStruct((nmt, C, 1), jnp.float32),
                   jax.ShapeDtypeStruct((nmt, C, 1), jnp.float32)),
        grid_spec=pltpu.PrefetchScalarGridSpec(
            num_scalar_prefetch=0,
            grid=(nmt, P),
            in_specs=[pl.BlockSpec((1, C, K), lambda m, p: (p, 0, 0)),
                      pl.BlockSpec((1, K, tm), lambda m, p: (p, 0, m))],
            out_specs=[pl.BlockSpec((1, C, tm), lambda m, p: (p, 0, m)),
                       pl.BlockSpec((1, C, 1), lambda m, p: (m, 0, 0)),
                       pl.BlockSpec((1, C, 1), lambda m, p: (m, 0, 0))]),
        compiler_params=pltpu.CompilerParams(
            dimension_semantics=("parallel", "arbitrary"),
            vmem_limit_bytes=budget),
    )(w_stack.astype(jnp.bfloat16), a_stack.astype(jnp.bfloat16))


def grouped_matmul_tanh(w_stack, a_stack):
    """w_stack (P,C,K), a_stack (P,K,M) -> tanh(W_p @ A_p): (P,C,M) fp32."""
    P, C, K = w_stack.shape
    M = a_stack.shape[2]
    budget = _vmem_budget()
    tm = _pick_m_tile(M, K, C, budget)
    nmt = M // tm
    return pl.pallas_call(
        _ggemm_tanh_kernel,
        out_shape=jax.ShapeDtypeStruct((P, C, M), jnp.float32),
        grid_spec=pltpu.PrefetchScalarGridSpec(
            num_scalar_prefetch=0,
            grid=(nmt, P),
            in_specs=[pl.BlockSpec((1, C, K), lambda m, p: (p, 0, 0)),
                      pl.BlockSpec((1, K, tm), lambda m, p: (p, 0, m))],
            out_specs=pl.BlockSpec((1, C, tm), lambda m, p: (p, 0, m))),
        compiler_params=pltpu.CompilerParams(
            dimension_semantics=("parallel", "parallel"),
            vmem_limit_bytes=budget),
    )(w_stack.astype(jnp.bfloat16), a_stack.astype(jnp.bfloat16))


# ------------------------------- XLA glue -----------------------------------

def _convt_s2_prep(x, w):
    """Sub-pixel decomposition of ConvT(k=4, s=2, p=1): output pixel
    (2m+rh, 2l+rw) only touches a 2x2 input window and a 2x2 sub-kernel.
    x: (N, C_in, H, W) bf16, w: (C_in, C_out, 4, 4)
    -> w_stack (4, C_out, C_in*4), a_stack (4, C_in*4, N*H*W), both bf16;
    parity p = rh*2 + rw; tap u*2+v uses input row m+rh+u-1 and kh = 3-rh-2u.
    TODO(synk): the A matrix is still materialized 4x tap-replicated in HBM by
    this XLA prep; an in-kernel gather from a parity-layout activation would
    cut A-side HBM traffic ~4x (dominant inter-layer traffic on v5e/v6e)."""
    N, C_in, H, W = x.shape
    C_out = w.shape[1]
    xp = jnp.pad(x, ((0, 0), (0, 0), (1, 1), (1, 1)))
    w_list, a_list = [], []
    for rh in range(2):
        for rw in range(2):
            sub = w[:, :, (3 - rh)::-2, (3 - rw)::-2]                # (Ci,Co,2,2)
            w_list.append(sub.transpose(1, 0, 2, 3).reshape(C_out, C_in * 4))
            taps = jnp.stack(
                [xp[:, :, rh + u: rh + u + H, rw + v: rw + v + W]
                 for u in range(2) for v in range(2)], axis=2)        # (N,Ci,4,H,W)
            a_list.append(taps.transpose(1, 2, 0, 3, 4).reshape(C_in * 4,
                                                                N * H * W))
    return (jnp.stack(w_list).astype(jnp.bfloat16),
            jnp.stack(a_list).astype(jnp.bfloat16))


def _deinterleave(y, N, H, W):
    """(4, C_out, N*H*W) parity-separated -> NCHW (N, C_out, 2H, 2W)."""
    C_out = y.shape[1]
    y = y.reshape(2, 2, C_out, N, H, W)            # (rh, rw, co, n, m, l)
    y = y.transpose(3, 2, 4, 0, 5, 1)              # (n, co, m, rh, l, rw)
    return y.reshape(N, C_out, 2 * H, 2 * W)


def _bn_lrelu_from_sums(y, s, ss, cnt, gamma, beta):
    """Finalize BatchNorm(batch stats) from the kernel's per-tile sums and
    apply the per-channel affine + LeakyReLU(0.2).  Elementwise, so XLA fuses
    it into the next layer's prep (no extra HBM pass over activations)."""
    tot = jnp.sum(s, axis=0)[:, 0]                 # (C,)
    tot2 = jnp.sum(ss, axis=0)[:, 0]
    mean = tot / cnt
    var = jnp.maximum(tot2 / cnt - mean * mean, 0.0)   # clamp: cancellation guard
    scale = gamma * jax.lax.rsqrt(var + _EPS)
    shift = beta - mean * scale
    t = y.astype(jnp.float32) * scale[None, :, None] + shift[None, :, None]
    return jnp.where(t > 0, t, 0.2 * t).astype(jnp.bfloat16)


# ------------------------------ Generator -----------------------------------

def init_generator_params(key, z_dim, img_channel, gf):
    """Synthetic DCGAN-style init: conv weights ~ N(0, 0.02); BatchNorm gamma
    ~ N(1, 0.1), beta ~ N(0, 0.1) (non-trivial so the affine path is checked);
    all ConvTranspose layers bias-free (matches the PyTorch module)."""
    chans = [z_dim, gf * 16, gf * 8, gf * 4, gf * 2]
    blocks = []
    for i in range(4):
        k = jax.random.fold_in(key, i)
        kw_, kg, kb = jax.random.split(k, 3)
        w = 0.02 * jax.random.normal(kw_, (chans[i], chans[i + 1], 4, 4),
                                     jnp.float32)
        gamma = 1.0 + 0.1 * jax.random.normal(kg, (chans[i + 1],), jnp.float32)
        beta = 0.1 * jax.random.normal(kb, (chans[i + 1],), jnp.float32)
        blocks.append((w, gamma, beta))
    k = jax.random.fold_in(key, 4)
    final_w = 0.02 * jax.random.normal(k, (chans[4], img_channel, 4, 4),
                                       jnp.float32)
    return {"blocks": blocks, "final_w": final_w}


def generator_forward(z, params):
    """z: (N, z_dim, 1, 1) NCHW -> (N, img_channel, 64, 64) NCHW fp32."""
    N = z.shape[0]

    # Block 1: ConvT(k=4, s=1, p=0) on a 1x1 input == one lane-dense GEMM
    #   (N, z_dim) @ (z_dim, C1*16), flat index = co*16 + kh*4 + kw.
    w, gamma, beta = params["blocks"][0]
    C1 = w.shape[1]
    y1 = lane_dense_gemm(z.reshape(N, -1), w.reshape(w.shape[0], C1 * 16))
    y1 = y1.astype(jnp.float32).reshape(N, C1, 16)
    mean = jnp.mean(y1, axis=(0, 2))
    var = jnp.maximum(jnp.mean(jnp.square(y1), axis=(0, 2)) - mean * mean, 0.0)
    scale = gamma * jax.lax.rsqrt(var + _EPS)
    shift = beta - mean * scale
    t = y1 * scale[None, :, None] + shift[None, :, None]
    x = jnp.where(t > 0, t, 0.2 * t).astype(jnp.bfloat16).reshape(N, C1, 4, 4)

    # Blocks 2-4: ConvT(k=4, s=2, p=1) + BatchNorm(batch stats) + LeakyReLU,
    # each as 4 sub-pixel parity GEMMs with in-kernel sum/sumsq accumulation.
    # TODO(synk): keep activations in the parity (P, C, M) layout between
    # layers to drop the deinterleave -> NCHW -> pad -> stack round trip.
    for w, gamma, beta in params["blocks"][1:]:
        H, W = x.shape[2], x.shape[3]
        w_stack, a_stack = _convt_s2_prep(x, w)
        y, s, ss = grouped_matmul_stats(w_stack, a_stack)      # (4, C, N*H*W)
        yn = _bn_lrelu_from_sums(y, s, ss, 4 * N * H * W, gamma, beta)
        x = _deinterleave(yn, N, H, W)                         # bf16 NCHW

    # Final: ConvT(k=4, s=2, p=1) + Tanh.
    H, W = x.shape[2], x.shape[3]
    w_stack, a_stack = _convt_s2_prep(x, params["final_w"])
    y = grouped_matmul_tanh(w_stack, a_stack)                  # (4, Cimg, M) fp32
    return _deinterleave(y, N, H, W)


# --------------------------- pure-JAX reference ------------------------------

def _convt_ref(x, w, stride, pad):
    """PyTorch ConvTranspose2d(bias=False) as a dilated conv (fp32 reference).
    x: (N, C_in, H, W), w: (C_in, C_out, k, k)."""
    k = w.shape[2]
    w_t = jnp.flip(w, axis=(2, 3)).transpose(1, 0, 2, 3)       # (C_out, C_in, k, k)
    return jax.lax.conv_general_dilated(
        x, w_t, window_strides=(1, 1),
        padding=[(k - 1 - pad, k - 1 - pad)] * 2,
        lhs_dilation=(stride, stride),
        dimension_numbers=("NCHW", "OIHW", "NCHW"))


def reference_forward(z, params):
    def bn_lrelu(x, gamma, beta):
        mean = jnp.mean(x, axis=(0, 2, 3), keepdims=True)
        var = jnp.mean(jnp.square(x - mean), axis=(0, 2, 3), keepdims=True)
        xn = (x - mean) * jax.lax.rsqrt(var + _EPS)
        xn = xn * gamma.reshape(1, -1, 1, 1) + beta.reshape(1, -1, 1, 1)
        return jnp.where(xn > 0, xn, 0.2 * xn)

    w, g, b = params["blocks"][0]
    x = bn_lrelu(_convt_ref(z, w, 1, 0), g, b)
    for w, g, b in params["blocks"][1:]:
        x = bn_lrelu(_convt_ref(x, w, 2, 1), g, b)
    return jnp.tanh(_convt_ref(x, params["final_w"], 2, 1))


# ---------------------------------- main -------------------------------------

if __name__ == "__main__":
    key = jax.random.PRNGKey(0)
    z_dim, img_channel, gf = 32, 3, 4   # generator_features = 4 (small)
    batch = 2

    params = init_generator_params(key, z_dim, img_channel, gf)
    z = jax.random.normal(jax.random.fold_in(key, 999),
                          (batch, z_dim, 1, 1), jnp.float32)

    out = jax.block_until_ready(jax.jit(generator_forward)(z, params))
    assert out.shape == (batch, img_channel, 64, 64), out.shape
    assert bool(jnp.all(jnp.isfinite(out)))
    assert bool(jnp.all(jnp.abs(out) <= 1.0))          # tanh range

    ref = jax.block_until_ready(jax.jit(reference_forward)(z, params))
    max_err = float(jnp.max(jnp.abs(out - ref)))
    assert max_err < 3e-2, f"max |pallas - reference| = {max_err}"

    print("KERNEL_OK")
</pallas_src>

<mosaic_0001>
module attributes {stable_mosaic.version = 11 : i64} {
  func.func @_gemm_kernel(%arg0: i32, %arg1: memref<2x32xbf16, #tpu.memory_space<vmem>>, %arg2: memref<32x1024xbf16, #tpu.memory_space<vmem>>, %arg3: memref<2x1024xbf16, #tpu.memory_space<vmem>>) attributes {dimension_semantics = [#tpu.dimension_semantics<arbitrary>], iteration_bounds = array<i64: 1>, scalar_prefetch = 0 : i64, scratch_operands = 0 : i64, tpu.core_type = #tpu.core_type<tc>, window_params = [{pipeline_mode = #tpu.pipeline_mode<synchronous>, transform_indices = @transform_0, window_bounds = array<i64: 2, 32>}, {pipeline_mode = #tpu.pipeline_mode<synchronous>, transform_indices = @transform_1, window_bounds = array<i64: 32, 1024>}, {pipeline_mode = #tpu.pipeline_mode<synchronous>, transform_indices = @transform_2, window_bounds = array<i64: 2, 1024>}]} {
    %c0 = arith.constant 0 : index
    %c0_0 = arith.constant 0 : index
    %0 = vector.load %arg1[%c0, %c0_0] : memref<2x32xbf16, #tpu.memory_space<vmem>>, vector<2x32xbf16>
    %c0_1 = arith.constant 0 : index
    %c0_2 = arith.constant 0 : index
    %1 = vector.load %arg2[%c0_1, %c0_2] : memref<32x1024xbf16, #tpu.memory_space<vmem>>, vector<32x1024xbf16>
    %cst = arith.constant dense<0.000000e+00> : vector<2x1024xf32>
    %2 = tpu.matmul %0, %1, %cst {dimension_numbers = #tpu.dot_dimension_numbers<[1], [0], [0], [1], [0, 0, 1, 1], [], []>} : vector<2x32xbf16>, vector<32x1024xbf16>, vector<2x1024xf32> -> vector<2x1024xf32>
    %3 = arith.truncf %2 : vector<2x1024xf32> to vector<2x1024xbf16>
    %c0_3 = arith.constant 0 : index
    %c0_4 = arith.constant 0 : index
    %4 = vector.load %arg3[%c0_3, %c0_4] : memref<2x1024xbf16, #tpu.memory_space<vmem>>, vector<2x1024xbf16>
    tpu.vector_store %arg3[%c0_3, %c0_4], %3 {strides = array<i32>} : memref<2x1024xbf16, #tpu.memory_space<vmem>>, vector<2x1024xbf16>,
    return
  }
  func.func @transform_0(%arg0: i32) -> (i32, i32) {
    %c0_i32 = arith.constant 0 : i32
    %c0_i32_0 = arith.constant 0 : i32
    %c0_i32_1 = arith.constant 0 : i32
    return %c0_i32, %c0_i32_0 : i32, i32
  }
  func.func @transform_1(%arg0: i32) -> (i32, i32) {
    %c0_i32 = arith.constant 0 : i32
    %c0_i32_0 = arith.constant 0 : i32
    %c0_i32_1 = arith.constant 0 : i32
    return %c0_i32, %c0_i32_0 : i32, i32
  }
  func.func @transform_2(%arg0: i32) -> (i32, i32) {
    %c0_i32 = arith.constant 0 : i32
    %c0_i32_0 = arith.constant 0 : i32
    %c0_i32_1 = arith.constant 0 : i32
    return %c0_i32, %c0_i32_0 : i32, i32
  }
}

module attributes {stable_mosaic.version = 11 : i64} {
  func.func @_ggemm_stats_kernel(%arg0: i32, %arg1: i32, %arg2: memref<1x32x256xbf16, #tpu.memory_space<vmem>>, %arg3: memref<1x256x32xbf16, #tpu.memory_space<vmem>>, %arg4: memref<1x32x32xbf16, #tpu.memory_space<vmem>>, %arg5: memref<1x32x1xf32, #tpu.memory_space<vmem>>, %arg6: memref<1x32x1xf32, #tpu.memory_space<vmem>>) attributes {dimension_semantics = [#tpu.dimension_semantics<parallel>, #tpu.dimension_semantics<arbitrary>], iteration_bounds = array<i64: 1, 4>, scalar_prefetch = 0 : i64, scratch_operands = 0 : i64, tpu.core_type = #tpu.core_type<tc>, window_params = [{transform_indices = @transform_0, window_bounds = array<i64: 1, 32, 256>}, {transform_indices = @transform_1, window_bounds = array<i64: 1, 256, 32>}, {transform_indices = @transform_2, window_bounds = array<i64: 1, 32, 32>}, {transform_indices = @transform_3, window_bounds = array<i64: 1, 32, 1>}, {transform_indices = @transform_4, window_bounds = array<i64: 1, 32, 1>}]} {
    %c0 = arith.constant 0 : index
    %c0_0 = arith.constant 0 : index
    %c0_1 = arith.constant 0 : index
    %0 = vector.load %arg2[%c0, %c0_0, %c0_1] : memref<1x32x256xbf16, #tpu.memory_space<vmem>>, vector<1x32x256xbf16>
    %1 = vector.shape_cast %0 : vector<1x32x256xbf16> to vector<32x256xbf16>
    %c0_2 = arith.constant 0 : index
    %c0_3 = arith.constant 0 : index
    %c0_4 = arith.constant 0 : index
    %2 = vector.load %arg3[%c0_2, %c0_3, %c0_4] : memref<1x256x32xbf16, #tpu.memory_space<vmem>>, vector<1x256x32xbf16>
    %3 = vector.shape_cast %2 : vector<1x256x32xbf16> to vector<256x32xbf16>
    %cst = arith.constant dense<0.000000e+00> : vector<32x32xf32>
    %4 = tpu.matmul %1, %3, %cst {dimension_numbers = #tpu.dot_dimension_numbers<[1], [0], [0], [1], [0, 0, 1, 1], [], []>} : vector<32x256xbf16>, vector<256x32xbf16>, vector<32x32xf32> -> vector<32x32xf32>
    %5 = arith.truncf %4 : vector<32x32xf32> to vector<32x32xbf16>
    %c0_5 = arith.constant 0 : index
    %c0_6 = arith.constant 0 : index
    %c0_7 = arith.constant 0 : index
    %6 = vector.load %arg4[%c0_5, %c0_6, %c0_7] : memref<1x32x32xbf16, #tpu.memory_space<vmem>>, vector<1x32x32xbf16>
    %7 = vector.shape_cast %6 : vector<1x32x32xbf16> to vector<32x32xbf16>
    %8 = vector.shape_cast %5 : vector<32x32xbf16> to vector<1x32x32xbf16>
    tpu.vector_store %arg4[%c0_5, %c0_6, %c0_7], %8 {strides = array<i32>} : memref<1x32x32xbf16, #tpu.memory_space<vmem>>, vector<1x32x32xbf16>,
    %cst_8 = arith.constant dense<0.000000e+00> : vector<32xf32>
    %9 = vector.multi_reduction <add>, %4, %cst_8 [1] : vector<32x32xf32> to vector<32xf32>
    %10 = vector.shape_cast %9 : vector<32xf32> to vector<32x1xf32>
    %11 = arith.mulf %4, %4 : vector<32x32xf32>
    %cst_9 = arith.constant dense<0.000000e+00> : vector<32xf32>
    %12 = vector.multi_reduction <add>, %11, %cst_9 [1] : vector<32x32xf32> to vector<32xf32>
    %13 = vector.shape_cast %12 : vector<32xf32> to vector<32x1xf32>
    %c0_i32 = arith.constant 0 : i32
    %14 = arith.cmpi eq, %arg1, %c0_i32 : i32
    %15 = arith.extui %14 : i1 to i32
    %c0_i32_10 = arith.constant 0 : i32
    %16 = arith.cmpi ne, %15, %c0_i32_10 : i32
    scf.if %16 {
      %c0_13 = arith.constant 0 : index
      %c0_14 = arith.constant 0 : index
      %c0_15 = arith.constant 0 : index
      %20 = vector.load %arg5[%c0_13, %c0_14, %c0_15] : memref<1x32x1xf32, #tpu.memory_space<vmem>>, vector<1x32x1xf32>
      %21 = vector.shape_cast %20 : vector<1x32x1xf32> to vector<32x1xf32>
      %22 = vector.shape_cast %10 : vector<32x1xf32> to vector<1x32x1xf32>
      tpu.vector_store %arg5[%c0_13, %c0_14, %c0_15], %22 {strides = array<i32>} : memref<1x32x1xf32, #tpu.memory_space<vmem>>, vector<1x32x1xf32>,
      %c0_16 = arith.constant 0 : index
      %c0_17 = arith.constant 0 : index
      %c0_18 = arith.constant 0 : index
      %23 = vector.load %arg6[%c0_16, %c0_17, %c0_18] : memref<1x32x1xf32, #tpu.memory_space<vmem>>, vector<1x32x1xf32>
      %24 = vector.shape_cast %23 : vector<1x32x1xf32> to vector<32x1xf32>
      %25 = vector.shape_cast %13 : vector<32x1xf32> to vector<1x32x1xf32>
      tpu.vector_store %arg6[%c0_16, %c0_17, %c0_18], %25 {strides = array<i32>} : memref<1x32x1xf32, #tpu.memory_space<vmem>>, vector<1x32x1xf32>,
    } else {
    }
    %c0_i32_11 = arith.constant 0 : i32
    %17 = arith.cmpi sgt, %arg1, %c0_i32_11 : i32
    %18 = arith.extui %17 : i1 to i32
    %c0_i32_12 = arith.constant 0 : i32
    %19 = arith.cmpi ne, %18, %c0_i32_12 : i32
    scf.if %19 {
      %c0_13 = arith.constant 0 : index
      %c0_14 = arith.constant 0 : index
      %c0_15 = arith.constant 0 : index
      %20 = vector.load %arg5[%c0_13, %c0_14, %c0_15] : memref<1x32x1xf32, #tpu.memory_space<vmem>>, vector<1x32x1xf32>
      %21 = vector.shape_cast %20 : vector<1x32x1xf32> to vector<32x1xf32>
      %22 = arith.addf %21, %10 : vector<32x1xf32>
      %c0_16 = arith.constant 0 : index
      %c0_17 = arith.constant 0 : index
      %c0_18 = arith.constant 0 : index
      %23 = vector.load %arg5[%c0_16, %c0_17, %c0_18] : memref<1x32x1xf32, #tpu.memory_space<vmem>>, vector<1x32x1xf32>
      %24 = vector.shape_cast %23 : vector<1x32x1xf32> to vector<32x1xf32>
      %25 = vector.shape_cast %22 : vector<32x1xf32> to vector<1x32x1xf32>
      tpu.vector_store %arg5[%c0_16, %c0_17, %c0_18], %25 {strides = array<i32>} : memref<1x32x1xf32, #tpu.memory_space<vmem>>, vector<1x32x1xf32>,
      %c0_19 = arith.constant 0 : index
      %c0_20 = arith.constant 0 : index
      %c0_21 = arith.constant 0 : index
      %26 = vector.load %arg6[%c0_19, %c0_20, %c0_21] : memref<1x32x1xf32, #tpu.memory_space<vmem>>, vector<1x32x1xf32>
      %27 = vector.shape_cast %26 : vector<1x32x1xf32> to vector<32x1xf32>
      %28 = arith.addf %27, %13 : vector<32x1xf32>
      %c0_22 = arith.constant 0 : index
      %c0_23 = arith.constant 0 : index
      %c0_24 = arith.constant 0 : index
      %29 = vector.load %arg6[%c0_22, %c0_23, %c0_24] : memref<1x32x1xf32, #tpu.memory_space<vmem>>, vector<1x32x1xf32>
      %30 = vector.shape_cast %29 : vector<1x32x1xf32> to vector<32x1xf32>
      %31 = vector.shape_cast %28 : vector<32x1xf32> to vector<1x32x1xf32>
      tpu.vector_store %arg6[%c0_22, %c0_23, %c0_24], %31 {strides = array<i32>} : memref<1x32x1xf32, #tpu.memory_space<vmem>>, vector<1x32x1xf32>,
    } else {
    }
    return
  }
  func.func @transform_0(%arg0: i32, %arg1: i32) -> (i32, i32, i32) {
    %c0_i32 = arith.constant 0 : i32
    %c0_i32_0 = arith.constant 0 : i32
    %c0_i32_1 = arith.constant 0 : i32
    return %arg1, %c0_i32, %c0_i32_0 : i32, i32, i32
  }
  func.func @transform_1(%arg0: i32, %arg1: i32) -> (i32, i32, i32) {
    %c0_i32 = arith.constant 0 : i32
    %c0_i32_0 = arith.constant 0 : i32
    return %arg1, %c0_i32, %arg0 : i32, i32, i32
  }
  func.func @transform_2(%arg0: i32, %arg1: i32) -> (i32, i32, i32) {
    %c0_i32 = arith.constant 0 : i32
    %c0_i32_0 = arith.constant 0 : i32
    return %arg1, %c0_i32, %arg0 : i32, i32, i32
  }
  func.func @transform_3(%arg0: i32, %arg1: i32) -> (i32, i32, i32) {
    %c0_i32 = arith.constant 0 : i32
    %c0_i32_0 = arith.constant 0 : i32
    %c0_i32_1 = arith.constant 0 : i32
    return %arg0, %c0_i32, %c0_i32_0 : i32, i32, i32
  }
  func.func @transform_4(%arg0: i32, %arg1: i32) -> (i32, i32, i32) {
    %c0_i32 = arith.constant 0 : i32
    %c0_i32_0 = arith.constant 0 : i32
    %c0_i32_1 = arith.constant 0 : i32
    return %arg0, %c0_i32, %c0_i32_0 : i32, i32, i32
  }
}

module attributes {stable_mosaic.version = 11 : i64} {
  func.func @_ggemm_stats_kernel(%arg0: i32, %arg1: i32, %arg2: memref<1x16x128xbf16, #tpu.memory_space<vmem>>, %arg3: memref<1x128x128xbf16, #tpu.memory_space<vmem>>, %arg4: memref<1x16x128xbf16, #tpu.memory_space<vmem>>, %arg5: memref<1x16x1xf32, #tpu.memory_space<vmem>>, %arg6: memref<1x16x1xf32, #tpu.memory_space<vmem>>) attributes {dimension_semantics = [#tpu.dimension_semantics<parallel>, #tpu.dimension_semantics<arbitrary>], iteration_bounds = array<i64: 1, 4>, scalar_prefetch = 0 : i64, scratch_operands = 0 : i64, tpu.core_type = #tpu.core_type<tc>, window_params = [{transform_indices = @transform_0, window_bounds = array<i64: 1, 16, 128>}, {transform_indices = @transform_1, window_bounds = array<i64: 1, 128, 128>}, {transform_indices = @transform_2, window_bounds = array<i64: 1, 16, 128>}, {transform_indices = @transform_3, window_bounds = array<i64: 1, 16, 1>}, {transform_indices = @transform_4, window_bounds = array<i64: 1, 16, 1>}]} {
    %c0 = arith.constant 0 : index
    %c0_0 = arith.constant 0 : index
    %c0_1 = arith.constant 0 : index
    %0 = vector.load %arg2[%c0, %c0_0, %c0_1] : memref<1x16x128xbf16, #tpu.memory_space<vmem>>, vector<1x16x128xbf16>
    %1 = vector.shape_cast %0 : vector<1x16x128xbf16> to vector<16x128xbf16>
    %c0_2 = arith.constant 0 : index
    %c0_3 = arith.constant 0 : index
    %c0_4 = arith.constant 0 : index
    %2 = vector.load %arg3[%c0_2, %c0_3, %c0_4] : memref<1x128x128xbf16, #tpu.memory_space<vmem>>, vector<1x128x128xbf16>
    %3 = vector.shape_cast %2 : vector<1x128x128xbf16> to vector<128x128xbf16>
    %cst = arith.constant dense<0.000000e+00> : vector<16x128xf32>
    %4 = tpu.matmul %1, %3, %cst {dimension_numbers = #tpu.dot_dimension_numbers<[1], [0], [0], [1], [0, 0, 1, 1], [], []>} : vector<16x128xbf16>, vector<128x128xbf16>, vector<16x128xf32> -> vector<16x128xf32>
    %5 = arith.truncf %4 : vector<16x128xf32> to vector<16x128xbf16>
    %c0_5 = arith.constant 0 : index
    %c0_6 = arith.constant 0 : index
    %c0_7 = arith.constant 0 : index
    %6 = vector.load %arg4[%c0_5, %c0_6, %c0_7] : memref<1x16x128xbf16, #tpu.memory_space<vmem>>, vector<1x16x128xbf16>
    %7 = vector.shape_cast %6 : vector<1x16x128xbf16> to vector<16x128xbf16>
    %8 = vector.shape_cast %5 : vector<16x128xbf16> to vector<1x16x128xbf16>
    tpu.vector_store %arg4[%c0_5, %c0_6, %c0_7], %8 {strides = array<i32>} : memref<1x16x128xbf16, #tpu.memory_space<vmem>>, vector<1x16x128xbf16>,
    %cst_8 = arith.constant dense<0.000000e+00> : vector<16xf32>
    %9 = vector.multi_reduction <add>, %4, %cst_8 [1] : vector<16x128xf32> to vector<16xf32>
    %10 = vector.shape_cast %9 : vector<16xf32> to vector<16x1xf32>
    %11 = arith.mulf %4, %4 : vector<16x128xf32>
    %cst_9 = arith.constant dense<0.000000e+00> : vector<16xf32>
    %12 = vector.multi_reduction <add>, %11, %cst_9 [1] : vector<16x128xf32> to vector<16xf32>
    %13 = vector.shape_cast %12 : vector<16xf32> to vector<16x1xf32>
    %c0_i32 = arith.constant 0 : i32
    %14 = arith.cmpi eq, %arg1, %c0_i32 : i32
    %15 = arith.extui %14 : i1 to i32
    %c0_i32_10 = arith.constant 0 : i32
    %16 = arith.cmpi ne, %15, %c0_i32_10 : i32
    scf.if %16 {
      %c0_13 = arith.constant 0 : index
      %c0_14 = arith.constant 0 : index
      %c0_15 = arith.constant 0 : index
      %20 = vector.load %arg5[%c0_13, %c0_14, %c0_15] : memref<1x16x1xf32, #tpu.memory_space<vmem>>, vector<1x16x1xf32>
      %21 = vector.shape_cast %20 : vector<1x16x1xf32> to vector<16x1xf32>
      %22 = vector.shape_cast %10 : vector<16x1xf32> to vector<1x16x1xf32>
      tpu.vector_store %arg5[%c0_13, %c0_14, %c0_15], %22 {strides = array<i32>} : memref<1x16x1xf32, #tpu.memory_space<vmem>>, vector<1x16x1xf32>,
      %c0_16 = arith.constant 0 : index
      %c0_17 = arith.constant 0 : index
      %c0_18 = arith.constant 0 : index
      %23 = vector.load %arg6[%c0_16, %c0_17, %c0_18] : memref<1x16x1xf32, #tpu.memory_space<vmem>>, vector<1x16x1xf32>
      %24 = vector.shape_cast %23 : vector<1x16x1xf32> to vector<16x1xf32>
      %25 = vector.shape_cast %13 : vector<16x1xf32> to vector<1x16x1xf32>
      tpu.vector_store %arg6[%c0_16, %c0_17, %c0_18], %25 {strides = array<i32>} : memref<1x16x1xf32, #tpu.memory_space<vmem>>, vector<1x16x1xf32>,
    } else {
    }
    %c0_i32_11 = arith.constant 0 : i32
    %17 = arith.cmpi sgt, %arg1, %c0_i32_11 : i32
    %18 = arith.extui %17 : i1 to i32
    %c0_i32_12 = arith.constant 0 : i32
    %19 = arith.cmpi ne, %18, %c0_i32_12 : i32
    scf.if %19 {
      %c0_13 = arith.constant 0 : index
      %c0_14 = arith.constant 0 : index
      %c0_15 = arith.constant 0 : index
      %20 = vector.load %arg5[%c0_13, %c0_14, %c0_15] : memref<1x16x1xf32, #tpu.memory_space<vmem>>, vector<1x16x1xf32>
      %21 = vector.shape_cast %20 : vector<1x16x1xf32> to vector<16x1xf32>
      %22 = arith.addf %21, %10 : vector<16x1xf32>
      %c0_16 = arith.constant 0 : index
      %c0_17 = arith.constant 0 : index
      %c0_18 = arith.constant 0 : index
      %23 = vector.load %arg5[%c0_16, %c0_17, %c0_18] : memref<1x16x1xf32, #tpu.memory_space<vmem>>, vector<1x16x1xf32>
      %24 = vector.shape_cast %23 : vector<1x16x1xf32> to vector<16x1xf32>
      %25 = vector.shape_cast %22 : vector<16x1xf32> to vector<1x16x1xf32>
      tpu.vector_store %arg5[%c0_16, %c0_17, %c0_18], %25 {strides = array<i32>} : memref<1x16x1xf32, #tpu.memory_space<vmem>>, vector<1x16x1xf32>,
      %c0_19 = arith.constant 0 : index
      %c0_20 = arith.constant 0 : index
      %c0_21 = arith.constant 0 : index
      %26 = vector.load %arg6[%c0_19, %c0_20, %c0_21] : memref<1x16x1xf32, #tpu.memory_space<vmem>>, vector<1x16x1xf32>
      %27 = vector.shape_cast %26 : vector<1x16x1xf32> to vector<16x1xf32>
      %28 = arith.addf %27, %13 : vector<16x1xf32>
      %c0_22 = arith.constant 0 : index
      %c0_23 = arith.constant 0 : index
      %c0_24 = arith.constant 0 : index
      %29 = vector.load %arg6[%c0_22, %c0_23, %c0_24] : memref<1x16x1xf32, #tpu.memory_space<vmem>>, vector<1x16x1xf32>
      %30 = vector.shape_cast %29 : vector<1x16x1xf32> to vector<16x1xf32>
      %31 = vector.shape_cast %28 : vector<16x1xf32> to vector<1x16x1xf32>
      tpu.vector_store %arg6[%c0_22, %c0_23, %c0_24], %31 {strides = array<i32>} : memref<1x16x1xf32, #tpu.memory_space<vmem>>, vector<1x16x1xf32>,
    } else {
    }
    return
  }
  func.func @transform_0(%arg0: i32, %arg1: i32) -> (i32, i32, i32) {
    %c0_i32 = arith.constant 0 : i32
    %c0_i32_0 = arith.constant 0 : i32
    %c0_i32_1 = arith.constant 0 : i32
    return %arg1, %c0_i32, %c0_i32_0 : i32, i32, i32
  }
  func.func @transform_1(%arg0: i32, %arg1: i32) -> (i32, i32, i32) {
    %c0_i32 = arith.constant 0 : i32
    %c0_i32_0 = arith.constant 0 : i32
    return %arg1, %c0_i32, %arg0 : i32, i32, i32
  }
  func.func @transform_2(%arg0: i32, %arg1: i32) -> (i32, i32, i32) {
    %c0_i32 = arith.constant 0 : i32
    %c0_i32_0 = arith.constant 0 : i32
    return %arg1, %c0_i32, %arg0 : i32, i32, i32
  }
  func.func @transform_3(%arg0: i32, %arg1: i32) -> (i32, i32, i32) {
    %c0_i32 = arith.constant 0 : i32
    %c0_i32_0 = arith.constant 0 : i32
    %c0_i32_1 = arith.constant 0 : i32
    return %arg0, %c0_i32, %c0_i32_0 : i32, i32, i32
  }
  func.func @transform_4(%arg0: i32, %arg1: i32) -> (i32, i32, i32) {
    %c0_i32 = arith.constant 0 : i32
    %c0_i32_0 = arith.constant 0 : i32
    %c0_i32_1 = arith.constant 0 : i32
    return %arg0, %c0_i32, %c0_i32_0 : i32, i32, i32
  }
}

module attributes {stable_mosaic.version = 11 : i64} {
  func.func @_ggemm_stats_kernel(%arg0: i32, %arg1: i32, %arg2: memref<1x8x64xbf16, #tpu.memory_space<vmem>>, %arg3: memref<1x64x512xbf16, #tpu.memory_space<vmem>>, %arg4: memref<1x8x512xbf16, #tpu.memory_space<vmem>>, %arg5: memref<1x8x1xf32, #tpu.memory_space<vmem>>, %arg6: memref<1x8x1xf32, #tpu.memory_space<vmem>>) attributes {dimension_semantics = [#tpu.dimension_semantics<parallel>, #tpu.dimension_semantics<arbitrary>], iteration_bounds = array<i64: 1, 4>, scalar_prefetch = 0 : i64, scratch_operands = 0 : i64, tpu.core_type = #tpu.core_type<tc>, window_params = [{transform_indices = @transform_0, window_bounds = array<i64: 1, 8, 64>}, {transform_indices = @transform_1, window_bounds = array<i64: 1, 64, 512>}, {transform_indices = @transform_2, window_bounds = array<i64: 1, 8, 512>}, {transform_indices = @transform_3, window_bounds = array<i64: 1, 8, 1>}, {transform_indices = @transform_4, window_bounds = array<i64: 1, 8, 1>}]} {
    %c0 = arith.constant 0 : index
    %c0_0 = arith.constant 0 : index
    %c0_1 = arith.constant 0 : index
    %0 = vector.load %arg2[%c0, %c0_0, %c0_1] : memref<1x8x64xbf16, #tpu.memory_space<vmem>>, vector<1x8x64xbf16>
    %1 = vector.shape_cast %0 : vector<1x8x64xbf16> to vector<8x64xbf16>
    %c0_2 = arith.constant 0 : index
    %c0_3 = arith.constant 0 : index
    %c0_4 = arith.constant 0 : index
    %2 = vector.load %arg3[%c0_2, %c0_3, %c0_4] : memref<1x64x512xbf16, #tpu.memory_space<vmem>>, vector<1x64x512xbf16>
    %3 = vector.shape_cast %2 : vector<1x64x512xbf16> to vector<64x512xbf16>
    %cst = arith.constant dense<0.000000e+00> : vector<8x512xf32>
    %4 = tpu.matmul %1, %3, %cst {dimension_numbers = #tpu.dot_dimension_numbers<[1], [0], [0], [1], [0, 0, 1, 1], [], []>} : vector<8x64xbf16>, vector<64x512xbf16>, vector<8x512xf32> -> vector<8x512xf32>
    %5 = arith.truncf %4 : vector<8x512xf32> to vector<8x512xbf16>
    %c0_5 = arith.constant 0 : index
    %c0_6 = arith.constant 0 : index
    %c0_7 = arith.constant 0 : index
    %6 = vector.load %arg4[%c0_5, %c0_6, %c0_7] : memref<1x8x512xbf16, #tpu.memory_space<vmem>>, vector<1x8x512xbf16>
    %7 = vector.shape_cast %6 : vector<1x8x512xbf16> to vector<8x512xbf16>
    %8 = vector.shape_cast %5 : vector<8x512xbf16> to vector<1x8x512xbf16>
    tpu.vector_store %arg4[%c0_5, %c0_6, %c0_7], %8 {strides = array<i32>} : memref<1x8x512xbf16, #tpu.memory_space<vmem>>, vector<1x8x512xbf16>,
    %cst_8 = arith.constant dense<0.000000e+00> : vector<8xf32>
    %9 = vector.multi_reduction <add>, %4, %cst_8 [1] : vector<8x512xf32> to vector<8xf32>
    %10 = vector.shape_cast %9 : vector<8xf32> to vector<8x1xf32>
    %11 = arith.mulf %4, %4 : vector<8x512xf32>
    %cst_9 = arith.constant dense<0.000000e+00> : vector<8xf32>
    %12 = vector.multi_reduction <add>, %11, %cst_9 [1] : vector<8x512xf32> to vector<8xf32>
    %13 = vector.shape_cast %12 : vector<8xf32> to vector<8x1xf32>
    %c0_i32 = arith.constant 0 : i32
    %14 = arith.cmpi eq, %arg1, %c0_i32 : i32
    %15 = arith.extui %14 : i1 to i32
    %c0_i32_10 = arith.constant 0 : i32
    %16 = arith.cmpi ne, %15, %c0_i32_10 : i32
    scf.if %16 {
      %c0_13 = arith.constant 0 : index
      %c0_14 = arith.constant 0 : index
      %c0_15 = arith.constant 0 : index
      %20 = vector.load %arg5[%c0_13, %c0_14, %c0_15] : memref<1x8x1xf32, #tpu.memory_space<vmem>>, vector<1x8x1xf32>
      %21 = vector.shape_cast %20 : vector<1x8x1xf32> to vector<8x1xf32>
      %22 = vector.shape_cast %10 : vector<8x1xf32> to vector<1x8x1xf32>
      tpu.vector_store %arg5[%c0_13, %c0_14, %c0_15], %22 {strides = array<i32>} : memref<1x8x1xf32, #tpu.memory_space<vmem>>, vector<1x8x1xf32>,
      %c0_16 = arith.constant 0 : index
      %c0_17 = arith.constant 0 : index
      %c0_18 = arith.constant 0 : index
      %23 = vector.load %arg6[%c0_16, %c0_17, %c0_18] : memref<1x8x1xf32, #tpu.memory_space<vmem>>, vector<1x8x1xf32>
      %24 = vector.shape_cast %23 : vector<1x8x1xf32> to vector<8x1xf32>
      %25 = vector.shape_cast %13 : vector<8x1xf32> to vector<1x8x1xf32>
      tpu.vector_store %arg6[%c0_16, %c0_17, %c0_18], %25 {strides = array<i32>} : memref<1x8x1xf32, #tpu.memory_space<vmem>>, vector<1x8x1xf32>,
    } else {
    }
    %c0_i32_11 = arith.constant 0 : i32
    %17 = arith.cmpi sgt, %arg1, %c0_i32_11 : i32
    %18 = arith.extui %17 : i1 to i32
    %c0_i32_12 = arith.constant 0 : i32
    %19 = arith.cmpi ne, %18, %c0_i32_12 : i32
    scf.if %19 {
      %c0_13 = arith.constant 0 : index
      %c0_14 = arith.constant 0 : index
      %c0_15 = arith.constant 0 : index
      %20 = vector.load %arg5[%c0_13, %c0_14, %c0_15] : memref<1x8x1xf32, #tpu.memory_space<vmem>>, vector<1x8x1xf32>
      %21 = vector.shape_cast %20 : vector<1x8x1xf32> to vector<8x1xf32>
      %22 = arith.addf %21, %10 : vector<8x1xf32>
      %c0_16 = arith.constant 0 : index
      %c0_17 = arith.constant 0 : index
      %c0_18 = arith.constant 0 : index
      %23 = vector.load %arg5[%c0_16, %c0_17, %c0_18] : memref<1x8x1xf32, #tpu.memory_space<vmem>>, vector<1x8x1xf32>
      %24 = vector.shape_cast %23 : vector<1x8x1xf32> to vector<8x1xf32>
      %25 = vector.shape_cast %22 : vector<8x1xf32> to vector<1x8x1xf32>
      tpu.vector_store %arg5[%c0_16, %c0_17, %c0_18], %25 {strides = array<i32>} : memref<1x8x1xf32, #tpu.memory_space<vmem>>, vector<1x8x1xf32>,
      %c0_19 = arith.constant 0 : index
      %c0_20 = arith.constant 0 : index
      %c0_21 = arith.constant 0 : index
      %26 = vector.load %arg6[%c0_19, %c0_20, %c0_21] : memref<1x8x1xf32, #tpu.memory_space<vmem>>, vector<1x8x1xf32>
      %27 = vector.shape_cast %26 : vector<1x8x1xf32> to vector<8x1xf32>
      %28 = arith.addf %27, %13 : vector<8x1xf32>
      %c0_22 = arith.constant 0 : index
      %c0_23 = arith.constant 0 : index
      %c0_24 = arith.constant 0 : index
      %29 = vector.load %arg6[%c0_22, %c0_23, %c0_24] : memref<1x8x1xf32, #tpu.memory_space<vmem>>, vector<1x8x1xf32>
      %30 = vector.shape_cast %29 : vector<1x8x1xf32> to vector<8x1xf32>
      %31 = vector.shape_cast %28 : vector<8x1xf32> to vector<1x8x1xf32>
      tpu.vector_store %arg6[%c0_22, %c0_23, %c0_24], %31 {strides = array<i32>} : memref<1x8x1xf32, #tpu.memory_space<vmem>>, vector<1x8x1xf32>,
    } else {
    }
    return
  }
  func.func @transform_0(%arg0: i32, %arg1: i32) -> (i32, i32, i32) {
    %c0_i32 = arith.constant 0 : i32
    %c0_i32_0 = arith.constant 0 : i32
    %c0_i32_1 = arith.constant 0 : i32
    return %arg1, %c0_i32, %c0_i32_0 : i32, i32, i32
  }
  func.func @transform_1(%arg0: i32, %arg1: i32) -> (i32, i32, i32) {
    %c0_i32 = arith.constant 0 : i32
    %c0_i32_0 = arith.constant 0 : i32
    return %arg1, %c0_i32, %arg0 : i32, i32, i32
  }
  func.func @transform_2(%arg0: i32, %arg1: i32) -> (i32, i32, i32) {
    %c0_i32 = arith.constant 0 : i32
    %c0_i32_0 = arith.constant 0 : i32
    return %arg1, %c0_i32, %arg0 : i32, i32, i32
  }
  func.func @transform_3(%arg0: i32, %arg1: i32) -> (i32, i32, i32) {
    %c0_i32 = arith.constant 0 : i32
    %c0_i32_0 = arith.constant 0 : i32
    %c0_i32_1 = arith.constant 0 : i32
    return %arg0, %c0_i32, %c0_i32_0 : i32, i32, i32
  }
  func.func @transform_4(%arg0: i32, %arg1: i32) -> (i32, i32, i32) {
    %c0_i32 = arith.constant 0 : i32
    %c0_i32_0 = arith.constant 0 : i32
    %c0_i32_1 = arith.constant 0 : i32
    return %arg0, %c0_i32, %c0_i32_0 : i32, i32, i32
  }
}

module attributes {stable_mosaic.version = 11 : i64} {
  func.func @_ggemm_tanh_kernel(%arg0: i32, %arg1: i32, %arg2: memref<1x3x32xbf16, #tpu.memory_space<vmem>>, %arg3: memref<1x32x2048xbf16, #tpu.memory_space<vmem>>, %arg4: memref<1x3x2048xf32, #tpu.memory_space<vmem>>) attributes {dimension_semantics = [#tpu.dimension_semantics<parallel>, #tpu.dimension_semantics<parallel>], iteration_bounds = array<i64: 1, 4>, scalar_prefetch = 0 : i64, scratch_operands = 0 : i64, tpu.core_type = #tpu.core_type<tc>, window_params = [{transform_indices = @transform_0, window_bounds = array<i64: 1, 3, 32>}, {transform_indices = @transform_1, window_bounds = array<i64: 1, 32, 2048>}, {transform_indices = @transform_2, window_bounds = array<i64: 1, 3, 2048>}]} {
    %c0 = arith.constant 0 : index
    %c0_0 = arith.constant 0 : index
    %c0_1 = arith.constant 0 : index
    %0 = vector.load %arg2[%c0, %c0_0, %c0_1] : memref<1x3x32xbf16, #tpu.memory_space<vmem>>, vector<1x3x32xbf16>
    %1 = vector.shape_cast %0 : vector<1x3x32xbf16> to vector<3x32xbf16>
    %c0_2 = arith.constant 0 : index
    %c0_3 = arith.constant 0 : index
    %c0_4 = arith.constant 0 : index
    %2 = vector.load %arg3[%c0_2, %c0_3, %c0_4] : memref<1x32x2048xbf16, #tpu.memory_space<vmem>>, vector<1x32x2048xbf16>
    %3 = vector.shape_cast %2 : vector<1x32x2048xbf16> to vector<32x2048xbf16>
    %cst = arith.constant dense<0.000000e+00> : vector<3x2048xf32>
    %4 = tpu.matmul %1, %3, %cst {dimension_numbers = #tpu.dot_dimension_numbers<[1], [0], [0], [1], [0, 0, 1, 1], [], []>} : vector<3x32xbf16>, vector<32x2048xbf16>, vector<3x2048xf32> -> vector<3x2048xf32>
    %5 = math.tanh %4 : vector<3x2048xf32>
    %c0_5 = arith.constant 0 : index
    %c0_6 = arith.constant 0 : index
    %c0_7 = arith.constant 0 : index
    %6 = vector.load %arg4[%c0_5, %c0_6, %c0_7] : memref<1x3x2048xf32, #tpu.memory_space<vmem>>, vector<1x3x2048xf32>
    %7 = vector.shape_cast %6 : vector<1x3x2048xf32> to vector<3x2048xf32>
    %8 = vector.shape_cast %5 : vector<3x2048xf32> to vector<1x3x2048xf32>
    tpu.vector_store %arg4[%c0_5, %c0_6, %c0_7], %8 {strides = array<i32>} : memref<1x3x2048xf32, #tpu.memory_space<vmem>>, vector<1x3x2048xf32>,
    return
  }
  func.func @transform_0(%arg0: i32, %arg1: i32) -> (i32, i32, i32) {
    %c0_i32 = arith.constant 0 : i32
    %c0_i32_0 = arith.constant 0 : i32
    %c0_i32_1 = arith.constant 0 : i32
    return %arg1, %c0_i32, %c0_i32_0 : i32, i32, i32
  }
  func.func @transform_1(%arg0: i32, %arg1: i32) -> (i32, i32, i32) {
    %c0_i32 = arith.constant 0 : i32
    %c0_i32_0 = arith.constant 0 : i32
    return %arg1, %c0_i32, %arg0 : i32, i32, i32
  }
  func.func @transform_2(%arg0: i32, %arg1: i32) -> (i32, i32, i32) {
    %c0_i32 = arith.constant 0 : i32
    %c0_i32_0 = arith.constant 0 : i32
    return %arg1, %c0_i32, %arg0 : i32, i32, i32
  }
}

</mosaic_0001>

<bundles_post_ra>
// kernel: generator_forward.5
= control target key start
LH: loop header
LB: loop body
LE: loop exit
PB: predicated region body
PF: predicated region fallthrough
CT: control target
= control target key end

     0   :  { %v374_v3 = vmov 0   ;;  %vm109_vm0 = vcmask 261120   ;;  %v375_v34 = vmov 1966171168   ;;  %v300_v36 = vlaneseq  ;;  %s449_s1 = inlined_call_operand.vmem [shape: bf16[32,1024], index: 1, kind: input, shape index: {}]   ;;  %s450_s0 = inlined_call_operand.vmem [shape: bf16[2,32], index: 0, kind: input, shape index: {}]   ;;  %s451_s2 = inlined_call_operand.vmem [shape: bf16[2,1024], index: 2, kind: output, shape index: {}]  }
   0x1   :  { %v13_v0 = vld [vmem:[%s449_s1] sm:$0xff]  ;;  %v14_v2 = vld [vmem:[%s449_s1 + $0x8] sm:$0xff]  ;;  %145 = vmatprep.mubr.bf16.mxu0 %v374_v3  ;;  %186 = vmatprep.mubr.bf16.mxu1 %v374_v3  ;;  %v15_v15 = vld [vmem:[%s449_s1 + $0x10] sm:$0xff]  ;;  %v298_v35 = vunpack.c.l.s4 %v375_v34 }
   0x2   :  { %v17_v1 = vld [vmem:[%s449_s1 + $0x20] sm:$0xff]  ;;  %v18_v5 = vld [vmem:[%s449_s1 + $0x28] sm:$0xff]  ;;  %v19_v16 = vld [vmem:[%s449_s1 + $0x30] sm:$0xff]  ;;  %v301_v38 = vshrl.u32 %v300_v36, 7 }
   0x3   :  { %v349_v4 = vcombine.high %v13_v0, %v17_v1  ;;  %v348_v6 = vcombine.low %v13_v0, %v17_v1  ;;  %v21_v7 = vld [vmem:[%s449_s1 + $0x40] sm:$0xff]  ;;  %v351_v9 = vcombine.high %v14_v2, %v18_v5  ;;  %v350_v10 = vcombine.low %v14_v2, %v18_v5  ;;  %v22_v12 = vld [vmem:[%s449_s1 + $0x48] sm:$0xff]  ;;  %v16_v17 = vld [vmem:[%s449_s1 + $0x18] sm:$0xff] }
   0x4   :  { %v25_v8 = vld [vmem:[%s449_s1 + $0x60] sm:$0xff]  ;;  %v26_v13 = vld [vmem:[%s449_s1 + $0x68] sm:$0xff]  ;;  %v20_v19 = vld [vmem:[%s449_s1 + $0x38] sm:$0xff]  ;;  %v353_v21 = vcombine.high %v15_v15, %v19_v16  ;;  %v352_v28 = vcombine.low %v15_v15, %v19_v16  ;;  %v299_v37 = vunpack.c.0.s8 %v298_v35 }
   0x5   :  { %v357_v11 = vcombine.high %v21_v7, %v25_v8  ;;  %113 = vmatprep.subr.bf16.mxu0 %v349_v4  ;;  %v359_v14 = vcombine.high %v22_v12, %v26_v13  ;;  %154 = vmatprep.subr.bf16.mxu1 %v351_v9  ;;  %v356_v18 = vcombine.low %v21_v7, %v25_v8  ;;  %v23_v23 = vld [vmem:[%s449_s1 + $0x50] sm:$0xff]  ;;  %v24_v25 = vld [vmem:[%s449_s1 + $0x58] sm:$0xff]  ;;  %v12_v27 = vld [vmem:[%s450_s0] sm:$0x1] }
   0x6   :  { %114 = vmatpush1.bf16.msra.mxu0 %v348_v6  ;;  %155 = vmatpush1.bf16.msra.mxu1 %v350_v10  ;;  %v358_v20 = vcombine.low %v22_v12, %v26_v13  ;;  %v355_v22 = vcombine.high %v16_v17, %v20_v19  ;;  %v27_v24 = vld [vmem:[%s449_s1 + $0x70] sm:$0xff]  ;;  %v28_v26 = vld [vmem:[%s449_s1 + $0x78] sm:$0xff]  ;;  %v354_v29 = vcombine.low %v16_v17, %v20_v19 }
   0x7   :  { %115 = vmatprep.subr.bf16.mxu0 %v357_v11  ;;  %156 = vmatprep.subr.bf16.mxu1 %v359_v14  ;;  %v361_v30 = vcombine.high %v23_v23, %v27_v24  ;;  %v363_v31 = vcombine.high %v24_v25, %v28_v26  ;;  %v360_v32 = vcombine.low %v23_v23, %v27_v24 }
   0x8   :  { %v362_v33 = vcombine.low %v24_v25, %v28_v26  ;;  %v302_v40 = vsub.s32 %v299_v37, %v301_v38 }
   0xa   :  { %116 = vmatpush1.bf16.msra.mxu0 %v356_v18  ;;  %157 = vmatpush1.bf16.msra.mxu1 %v358_v20 }
   0xb   :  { %195 = vmatprep.subr.bf16.mxu0 %v353_v21  ;;  %236 = vmatprep.subr.bf16.mxu1 %v355_v22 }
   0xd   :  { %364 = vmatmul.mubr.msk.bf16.vlgmr.msra.gmra.mrb[0].mxu0 %vm109_vm0, %v12_v27  ;;  %365 = vmatmul.mubr.msk.bf16.vlgmr.msra.gmra.mrb[0].mxu1 %vm109_vm0, %v12_v27 }
   0xe   :  { %196 = vmatpush1.bf16.msra.mxu0 %v352_v28  ;;  %237 = vmatpush1.bf16.msra.mxu1 %v354_v29 }
   0xf   :  { %197 = vmatprep.subr.bf16.mxu0 %v361_v30  ;;  %238 = vmatprep.subr.bf16.mxu1 %v363_v31 }
  0x10   :  { %227 = vmatprep.mubr.bf16.mxu0 %v374_v3  ;;  %268 = vmatprep.mubr.bf16.mxu1 %v374_v3 }
  0x12   :  { %198 = vmatpush1.bf16.msra.mxu0 %v360_v32  ;;  %239 = vmatpush1.bf16.msra.mxu1 %v362_v33 }
  0x15   :  { %366 = vmatmul.mubr.msk.bf16.vlgmr.msra.gmra.mrb[4].mxu0 %vm109_vm0, %v12_v27  ;;  %367 = vmatmul.mubr.msk.bf16.vlgmr.msra.gmra.mrb[4].mxu1 %vm109_vm0, %v12_v27 }
  0xe0   :  { %v147_v39 = vpop.f32.mrb[0].mxu0  ;;  %v188_v41 = vpop.f32.mrb[0].mxu1 }
  0xe1   :  { %v149_v42 = vpop.f32.mrb[1].mxu0  ;;  %v190_v44 = vpop.f32.mrb[1].mxu1 }
  0xe2   :  { %v368_v43 = vpack.c.bf16 %v149_v42, %v147_v39  ;;  %v151_v45 = vpop.f32.mrb[2].mxu0  ;;  %v369_v46 = vpack.c.bf16 %v190_v44, %v188_v41  ;;  %v192_v47 = vpop.f32.mrb[2].mxu1 }
  0xe3   :  { %v152_v48 = vpop.f32.mrb[3].mxu0  ;;  %v193_v50 = vpop.f32.mrb[3].mxu1 }
  0xe4   :  { %v303_v49 = vrot.slane %v368_v43, %v302_v40  ;;  %v310_v51 = vrot.slane %v369_v46, %v302_v40 }
  0xe6   :  { %v325_v52 = vcombine.low %v303_v49, %v310_v51 }
  0xe8   :  { %v229_v53 = vpop.f32.mrb[4].mxu0  ;;  %v270_v54 = vpop.f32.mrb[4].mxu1  ;;  %v333_v2 = vrot.slane %v325_v52, %v302_v40 }
  0xe9   :  { %v231_v55 = vpop.f32.mrb[5].mxu0  ;;  %v272_v57 = vpop.f32.mrb[5].mxu1 }
  0xea   :  { %v370_v56 = vpack.c.bf16 %v231_v55, %v229_v53  ;;  %v233_v58 = vpop.f32.mrb[6].mxu0  ;;  %v371_v59 = vpack.c.bf16 %v272_v57, %v270_v54  ;;  %v274_v60 = vpop.f32.mrb[6].mxu1 }
  0xeb   :  { %v234_v61 = vpop.f32.mrb[7].mxu0  ;;  %v275_v63 = vpop.f32.mrb[7].mxu1 }
  0xec   :  { %v317_v62 = vrot.slane %v370_v56, %v302_v40  ;;  %v324_v0 = vrot.slane %v371_v59, %v302_v40 }
  0xee   :  { %v326_v1 = vcombine.low %v317_v62, %v324_v0 }
  0xf0   :  { %v340_v3 = vrot.slane %v326_v1, %v302_v40 }
  0xf2   :  { %v341_v4 = vcombine.low %v333_v2, %v340_v3 }
  0xf4   :  { %343 = vst [vmem:[%s451_s2] sm:$0xff] %v341_v4 }

// kernel: generator_forward.6
= control target key start
LH: loop header
LB: loop body
LE: loop exit
PB: predicated region body
PF: predicated region fallthrough
CT: control target
= control target key end

     0   :  { %s911_s15 = smov 0   ;;  %s913_s16 = smov 0   ;;  %s1068_s0 = inlined_call_operand.vmem [shape: bf16[4,32,256], index: 0, kind: input, shape index: {}]   ;;  %s1069_s1 = inlined_call_operand.vmem [shape: bf16[4,256,32], index: 1, kind: input, shape index: {}]   ;;  %s1070_s2 = inlined_call_operand.vmem [shape: bf16[4,32,32], index: 2, kind: output, shape index: {0}]   ;;  %s1071_s3 = inlined_call_operand.vmem [shape: f32[1,32,1], index: 3, kind: output, shape index: {1}]   ;;  %s1072_s4 = inlined_call_operand.vmem [shape: f32[1,32,1], index: 4, kind: output, shape index: {2}]  }
   0x1   :  { %s915_s17 = smov 0  }
   0x2 LB: > { %s24_s18 = sadd.s32 1, %s880_s16  ;;  %p728_p0 = scmp.ge.s32.totalorder %s884_s17, 1  ;;  %s884_s17 = sphi %s915_s17, %s15_s17   ;;  %s880_s16 = sphi %s913_s16, %s1074_s16   ;;  %s876_s15 = sphi %s911_s15, %s1073_s15  }
   0x3   : > { %p25_p1 = scmp.ge.s32.totalorder %s24_s18, 4  ;;  %p196_p2 = scmp.lt.s32.totalorder %s884_s17, 5 }
   0x5   : > { %s1076_s18 = smov (%p25_p1, %s24_s18), 0  ;;  %p197_p3 = pnand %p728_p0, %p196_p2 }
   0x6   : > { %p243_p4 = scmp.lt.s32.totalorder (!%p197_p3), %s876_s15, 3  ;;  %vm497_vm0 = vcmask (!%p197_p3), 261120   ;;  %vm492_vm1 = vcmask (!%p197_p3), 257024   ;;  %p759_p5 = scmp.ne.s32.totalorder (!%p197_p3), %s876_s15, 0 }
   0x7   : > { %200 = sbr.rel (%p197_p3) target bundleno = 433 (0x1b1), region = 28 }
   0xe   : > { %s933_s19 = scalar_select %p243_p4, %s876_s15, 3 }
   0xf   : > { %vm530_vm2 = vcmask (!%p759_p5), 7168  }
  0x10   : > { %s766_s20 = sshll.u32 %s933_s19, 7  ;;  %s765_s24 = sshll.u32 %s933_s19, 5 }
  0x11   : > { %s939_s23 = scalar_lea.vmem %s1069_s1, %s766_s20  ;;  %s247_s27 = scalar_lea.vmem %s1068_s0, %s765_s24 }
  0x12   : > { %v840_v0 = vld [vmem:[%s939_s23 + $0x40] sm:$0xff]   ;;  %v842_v2 = vld [vmem:[%s939_s23 + $0x48] sm:$0xff]   ;;  %v844_v4 = vld [vmem:[%s939_s23 + $0x50] sm:$0xff]   ;;  %s767_s28 = sshll.u32 %s933_s19, 4 }
  0x13   : > { %v841_v1 = vld [vmem:[%s939_s23] sm:$0xff]   ;;  %772 = vmatprep.subr.bf16.mxu0 %v840_v0  ;;  %800 = vmatprep.subr.bf16.mxu1 %v840_v0  ;;  %v843_v3 = vld [vmem:[%s939_s23 + $0x8] sm:$0xff]   ;;  %v845_v5 = vld [vmem:[%s939_s23 + $0x10] sm:$0xff]   ;;  %s263_s5 = scalar_lea.vmem %s1070_s2, %s767_s28 }
  0x14   : > { %773 = vmatpush3.bf16.msra.mxu0 %v841_v1  ;;  %808 = vmatpush3.bf16.msra.mxu1 %v841_v1  ;;  %v846_v6 = vld [vmem:[%s939_s23 + $0x58] sm:$0xff]   ;;  %v848_v8 = vld [vmem:[%s939_s23 + $0x60] sm:$0xff]   ;;  %v850_v10 = vld [vmem:[%s939_s23 + $0x68] sm:$0xff]  }
  0x15   : > { %774 = vmatprep.subr.bf16.mxu0 %v842_v2  ;;  %801 = vmatprep.subr.bf16.mxu1 %v842_v2  ;;  %v847_v7 = vld [vmem:[%s939_s23 + $0x18] sm:$0xff]   ;;  %v849_v9 = vld [vmem:[%s939_s23 + $0x20] sm:$0xff]   ;;  %v851_v13 = vld [vmem:[%s939_s23 + $0x28] sm:$0xff]  }
  0x16   : > { %v858_v11 = vld [vmem:[%s247_s27 + $0x4] ss:$8 sps:$4 sm:$0xff]   ;;  %v861_v12 = vld [vmem:[%s247_s27 + $0x14] ss:$8 sps:$4 sm:$0xff]   ;;  %v856_v18 = vld [vmem:[%s247_s27] ss:$8 sps:$4 sm:$0xff]  }
  0x17   : > { %v852_v14 = vld [vmem:[%s939_s23 + $0x70] sm:$0xff]   ;;  %459 = vmatprep.mubr.bf16.mxu0 %v858_v11  ;;  %467 = vmatprep.mubr.bf16.mxu1 %v861_v12  ;;  %v854_v16 = vld [vmem:[%s939_s23 + $0x78] sm:$0xff]  }
  0x18   : > { %775 = vmatpush3.bf16.msra.mxu0 %v843_v3  ;;  %809 = vmatpush3.bf16.msra.mxu1 %v843_v3  ;;  %v853_v15 = vld [vmem:[%s939_s23 + $0x30] sm:$0xff]   ;;  %v855_v17 = vld [vmem:[%s939_s23 + $0x38] sm:$0xff]  }
  0x19   : > { %776 = vmatprep.subr.bf16.mxu0 %v844_v4  ;;  %802 = vmatprep.subr.bf16.mxu1 %v844_v4  ;;  %v859_v19 = vld [vmem:[%s247_s27 + $0x10] ss:$8 sps:$4 sm:$0xff]  }
  0x1c   : > { %777 = vmatpush3.bf16.msra.mxu0 %v845_v5  ;;  %810 = vmatpush3.bf16.msra.mxu1 %v845_v5 }
  0x1d   : > { %778 = vmatprep.subr.bf16.mxu0 %v846_v6  ;;  %803 = vmatprep.subr.bf16.mxu1 %v846_v6 }
  0x20   : > { %779 = vmatpush3.bf16.msra.mxu0 %v847_v7  ;;  %811 = vmatpush3.bf16.msra.mxu1 %v847_v7 }
  0x21   : > { %780 = vmatprep.subr.bf16.mxu0 %v848_v8  ;;  %804 = vmatprep.subr.bf16.mxu1 %v848_v8 }
  0x24   : > { %781 = vmatpush3.bf16.msra.mxu0 %v849_v9  ;;  %812 = vmatpush3.bf16.msra.mxu1 %v849_v9 }
  0x25   : > { %782 = vmatprep.subr.bf16.mxu0 %v850_v10  ;;  %805 = vmatprep.subr.bf16.mxu1 %v850_v10 }
  0x28   : > { %783 = vmatpush3.bf16.msra.mxu0 %v851_v13  ;;  %813 = vmatpush3.bf16.msra.mxu1 %v851_v13 }
  0x29   : > { %784 = vmatprep.subr.bf16.mxu0 %v852_v14  ;;  %806 = vmatprep.subr.bf16.mxu1 %v852_v14 }
  0x2c   : > { %785 = vmatpush3.bf16.msra.mxu0 %v853_v15  ;;  %814 = vmatpush3.bf16.msra.mxu1 %v853_v15 }
  0x2d   : > { %786 = vmatprep.subr.bf16.mxu0 %v854_v16  ;;  %807 = vmatprep.subr.bf16.mxu1 %v854_v16 }
  0x30   : > { %787 = vmatpush3.bf16.msra.mxu0 %v855_v17  ;;  %815 = vmatpush3.bf16.msra.mxu1 %v855_v17 }
  0x33   : > { %460 = vmatmul.mubr.bf16.vlgmr.msra.gmra.mrb[0].mxu0 %v856_v18  ;;  %468 = vmatmul.mubr.bf16.vlgmr.msra.gmra.mrb[0].mxu1 %v859_v19 }
 0x106   : > { %v788_v20 = vpop.f32.mrb[0].mxu0  ;;  %v794_v21 = vpop.f32.mrb[0].mxu1 }
 0x107   : > { %v789_v22 = vpop.f32.mrb[1].mxu0  ;;  %v795_v23 = vpop.f32.mrb[1].mxu1 }
 0x108   : > { %v790_v24 = vadd.f32 %v789_v22, %v788_v20  ;;  %v796_v25 = vadd.f32 %v795_v23, %v794_v21  ;;  %v791_v26 = vpop.f32.mrb[2].mxu0  ;;  %v797_v27 = vpop.f32.mrb[2].mxu1 }
 0x109   : > { %v792_v28 = vpop.f32.mrb[3].mxu0  ;;  %v798_v29 = vpop.f32.mrb[3].mxu1 }
 0x10a   : > { %v768_v30 = vpack.c.bf16 %v790_v24, %v790_v24  ;;  %v770_v31 = vpack.c.bf16 %v796_v25, %v796_v25  ;;  %v793_v32 = vadd.f32 %v792_v28, %v791_v26  ;;  %v799_v33 = vadd.f32 %v798_v29, %v797_v27 }
 0x10b   : > { %v504_v34 = vsel %vm497_vm0, %v796_v25, 0.0  ;;  %v498_v35 = vsel %vm497_vm0, %v790_v24, 0.0  ;;  %v510_v41 = vmul.f32 %v790_v24, %v790_v24  ;;  %v512_v45 = vmul.f32 %v796_v25, %v796_v25 }
 0x10c   : > { %493 = vst.msk [vmem:[%s263_s5] sm:$0xf] %vm492_vm1, %v768_v30  ;;  %495 = vst.msk [vmem:[%s263_s5 + $0x8] sm:$0xf] %vm492_vm1, %v770_v31  ;;  %v769_v36 = vpack.c.bf16 %v793_v32, %v793_v32  ;;  %v771_v37 = vpack.c.bf16 %v799_v33, %v799_v33  ;;  %505 = vadd.xlane.f32.xlu1 %v504_v34  ;;  %499 = vadd.xlane.f32.xlu0 %v498_v35  ;;  %v507_v38 = vsel %vm497_vm0, %v799_v33, 0.0 }
 0x10d   : > { %v501_v39 = vsel %vm497_vm0, %v793_v32, 0.0  ;;  %v511_v40 = vmul.f32 %v793_v32, %v793_v32  ;;  %v514_v43 = vsel %vm497_vm0, %v510_v41, 0.0  ;;  %v513_v44 = vmul.f32 %v799_v33, %v799_v33 }
 0x10e   : > { %494 = vst.msk [vmem:[%s263_s5 + $0x4] sm:$0xf] %vm492_vm1, %v769_v36  ;;  %496 = vst.msk [vmem:[%s263_s5 + $0xc] sm:$0xf] %vm492_vm1, %v771_v37  ;;  %v520_v47 = vsel %vm497_vm0, %v512_v45, 0.0 }
 0x10f   : > { %v517_v42 = vsel %vm497_vm0, %v511_v40, 0.0  ;;  %v523_v46 = vsel %vm497_vm0, %v513_v44, 0.0 }
 0x110   : > { %508 = vadd.xlane.f32.xlu1 %v507_v38  ;;  %502 = vadd.xlane.f32.xlu0 %v501_v39 }
 0x114   : > { %518 = vadd.xlane.f32.xlu1 %v517_v42  ;;  %515 = vadd.xlane.f32.xlu0 %v514_v43 }
 0x118   : > { %524 = vadd.xlane.f32.xlu1 %v523_v46  ;;  %521 = vadd.xlane.f32.xlu0 %v520_v47 }
 0x199   : > { %v506_v48 = vpop.xlane.xlu1 %505  ;;  %v500_v49 = vpop.xlane.xlu0 %499 }
 0x19a   : > { %531 = vst.msk [vmem:[%s1071_s3] sm:$0xff] (!%p759_p5), %vm530_vm2, %v500_v49  ;;  %533 = vst.msk [vmem:[%s1071_s3 + $0x10] sm:$0xff] (!%p759_p5), %vm530_vm2, %v506_v48 }
 0x19d   : > { %v509_v50 = vpop.xlane.xlu1 %508  ;;  %v503_v51 = vpop.xlane.xlu0 %502 }
 0x19e   : > { %532 = vst.msk [vmem:[%s1071_s3 + $0x8] sm:$0xff] (!%p759_p5), %vm530_vm2, %v503_v51  ;;  %534 = vst.msk [vmem:[%s1071_s3 + $0x18] sm:$0xff] (!%p759_p5), %vm530_vm2, %v509_v50 }
 0x19f   : > { %529 = sbr.rel (%p759_p5) target bundleno = 423 (0x1a7), region = 32 }
 0x1a1   : > { %v519_v52 = vpop.xlane.xlu1 %518  ;;  %v516_v53 = vpop.xlane.xlu0 %515 }
 0x1a2   : > { %535 = vst.msk [vmem:[%s1072_s4] sm:$0xff] (!%p759_p5), %vm530_vm2, %v516_v53  ;;  %536 = vst.msk [vmem:[%s1072_s4 + $0x8] sm:$0xff] (!%p759_p5), %vm530_vm2, %v519_v52 }
 0x1a5   : > { %v525_v54 = vpop.xlane.xlu1 %524  ;;  %v522_v55 = vpop.xlane.xlu0 %521 }
 0x1a6   : > { %537 = vst.msk [vmem:[%s1072_s4 + $0x10] sm:$0xff] %vm530_vm2, %v522_v55  ;;  %538 = vst.msk [vmem:[%s1072_s4 + $0x18] sm:$0xff] %vm530_vm2, %v525_v54 }
 0x1a7 PF: > { %p760_p6 = scmp.le.s32.totalorder %s876_s15, 0 }
 0x1a8   : > { %v543_v56 = vld [vmem:[%s1071_s3] sm:$0xff] (!%p760_p6)  ;;  %vm551_vm3 = vcmask (!%p760_p6), 7168   ;;  %v544_v57 = vld [vmem:[%s1071_s3 + $0x8] sm:$0xff] (!%p760_p6)  ;;  %v545_v58 = vld [vmem:[%s1071_s3 + $0x10] sm:$0xff] (!%p760_p6) }
 0x1a9   : > { %542 = sbr.rel (%p760_p6) target bundleno = 433 (0x1b1), region = 36  ;;  %v547_v59 = vadd.f32 (!%p760_p6), %v543_v56, %v500_v49  ;;  %v548_v60 = vadd.f32 (!%p760_p6), %v544_v57, %v503_v51  ;;  %v549_v61 = vadd.f32 (!%p760_p6), %v545_v58, %v506_v48  ;;  %v546_v62 = vld [vmem:[%s1071_s3 + $0x18] sm:$0xff] (!%p760_p6) }
 0x1aa   : > { %v556_v63 = vld [vmem:[%s1072_s4] sm:$0xff] (!%p760_p6)  ;;  %v557_v0 = vld [vmem:[%s1072_s4 + $0x8] sm:$0xff] (!%p760_p6)  ;;  %v550_v1 = vadd.f32 (!%p760_p6), %v546_v62, %v509_v50 }
 0x1ab   : > { %v560_v2 = vadd.f32 (!%p760_p6), %v556_v63, %v516_v53  ;;  %v561_v3 = vadd.f32 (!%p760_p6), %v557_v0, %v519_v52  ;;  %552 = vst.msk [vmem:[%s1071_s3] sm:$0xff] (!%p760_p6), %vm551_vm3, %v547_v59  ;;  %553 = vst.msk [vmem:[%s1071_s3 + $0x8] sm:$0xff] (!%p760_p6), %vm551_vm3, %v548_v60 }
 0x1ac   : > { %554 = vst.msk [vmem:[%s1071_s3 + $0x10] sm:$0xff] (!%p760_p6), %vm551_vm3, %v549_v61  ;;  %555 = vst.msk [vmem:[%s1071_s3 + $0x18] sm:$0xff] (!%p760_p6), %vm551_vm3, %v550_v1 }
 0x1ad   : > { %v558_v4 = vld [vmem:[%s1072_s4 + $0x10] sm:$0xff] (!%p760_p6)  ;;  %v559_v5 = vld [vmem:[%s1072_s4 + $0x18] sm:$0xff] (!%p760_p6)  ;;  %564 = vst.msk [vmem:[%s1072_s4] sm:$0xff] (!%p760_p6), %vm551_vm3, %v560_v2  ;;  %565 = vst.msk [vmem:[%s1072_s4 + $0x8] sm:$0xff] (!%p760_p6), %vm551_vm3, %v561_v3 }
 0x1ae   : > { %v562_v6 = vadd.f32 (!%p760_p6), %v558_v4, %v522_v55  ;;  %v563_v7 = vadd.f32 (!%p760_p6), %v559_v5, %v525_v54 }
 0x1b0   : > { %566 = vst.msk [vmem:[%s1072_s4 + $0x10] sm:$0xff] %vm551_vm3, %v562_v6  ;;  %567 = vst.msk [vmem:[%s1072_s4 + $0x18] sm:$0xff] %vm551_vm3, %v563_v7 }
 0x1b1 PF: > { %s15_s17 = sadd.s32 1, %s884_s17   ;;  %s1073_s15 = smov %s880_s16 }
 0x1b2   : > { %p12_p7 = scmp.ge.s32.totalorder %s15_s17, 6   ;;  %s1074_s16 = smov %s1076_s18 }
 0x1b4   :  { %14 = sbr.rel (!%p12_p7) target bundleno = 2 (0x2), region = 93 }

// kernel: generator_forward.7
= control target key start
LH: loop header
LB: loop body
LE: loop exit
PB: predicated region body
PF: predicated region fallthrough
CT: control target
= control target key end

     0   :  { %s743_s15 = smov 0   ;;  %s745_s16 = smov 0   ;;  %s825_s0 = inlined_call_operand.vmem [shape: bf16[4,16,128], index: 0, kind: input, shape index: {}]   ;;  %s826_s1 = inlined_call_operand.vmem [shape: bf16[4,128,128], index: 1, kind: input, shape index: {}]   ;;  %s827_s2 = inlined_call_operand.vmem [shape: bf16[4,16,128], index: 2, kind: output, shape index: {0}]   ;;  %s828_s3 = inlined_call_operand.vmem [shape: f32[1,16,1], index: 3, kind: output, shape index: {1}]   ;;  %s829_s4 = inlined_call_operand.vmem [shape: f32[1,16,1], index: 4, kind: output, shape index: {2}]  }
   0x1   :  { %s747_s17 = smov 0  }
   0x2 LB: > { %s24_s18 = sadd.s32 1, %s710_s16  ;;  %p594_p0 = scmp.ge.s32.totalorder %s714_s17, 1  ;;  %s714_s17 = sphi %s747_s17, %s15_s17   ;;  %s710_s16 = sphi %s745_s16, %s831_s16   ;;  %s706_s15 = sphi %s743_s15, %s830_s15  }
   0x3   : > { %p25_p1 = scmp.ge.s32.totalorder %s24_s18, 4  ;;  %p196_p2 = scmp.lt.s32.totalorder %s714_s17, 5 }
   0x5   : > { %s833_s18 = smov (%p25_p1, %s24_s18), 0  ;;  %p197_p3 = pnand %p594_p0, %p196_p2 }
   0x6   : > { %p243_p4 = scmp.lt.s32.totalorder (!%p197_p3), %s706_s15, 3  ;;  %v716_v0 = vmov (!%p197_p3), 0.0   ;;  %vm717_vm0 = vmmov (!%p197_p3), 0   ;;  %p612_p5 = scmp.ne.s32.totalorder (!%p197_p3), %s706_s15, 0 }
   0x7   : > { %200 = sbr.rel (%p197_p3) target bundleno = 421 (0x1a5), region = 28  ;;  %637 = vmatprep.subr.bf16.mxu0 (!%p197_p3), %v716_v0  ;;  %653 = vmatprep.mubr.msk.bf16.mxu0 (!%p197_p3), %vm717_vm0, %v716_v0 }
   0xe   : > { %s765_s19 = scalar_select %p243_p4, %s706_s15, 3 }
   0xf   : > { %vm412_vm1 = vcmask (!%p612_p5), 7168  }
  0x10   : > { %s619_s20 = sshll.u32 %s765_s19, 6  ;;  %s618_s24 = sshll.u32 %s765_s19, 3 }
  0x11   : > { %s255_s23 = scalar_lea.vmem %s826_s1, %s619_s20  ;;  %s247_s27 = scalar_lea.vmem %s825_s0, %s618_s24 }
  0x12   : > { %v683_v1 = vld [vmem:[%s255_s23] sm:$0xff]   ;;  %v684_v2 = vld [vmem:[%s255_s23 + $0x8] sm:$0xff]   ;;  %v685_v3 = vld [vmem:[%s255_s23 + $0x10] sm:$0xff]   ;;  %s263_s30 = scalar_lea.vmem %s827_s2, %s618_s24 }
  0x13   : > { %638 = vmatpush3.bf16.msra.mxu0 %v683_v1  ;;  %v686_v4 = vld [vmem:[%s255_s23 + $0x18] sm:$0xff]   ;;  %v687_v5 = vld [vmem:[%s255_s23 + $0x20] sm:$0xff]   ;;  %v688_v6 = vld [vmem:[%s255_s23 + $0x28] sm:$0xff]  }
  0x14   : > { %639 = vmatprep.subr.bf16.mxu0 %v716_v0  ;;  %v689_v7 = vld [vmem:[%s255_s23 + $0x30] sm:$0xff]   ;;  %v690_v8 = vld [vmem:[%s255_s23 + $0x38] sm:$0xff]   ;;  %v691_v9 = vld [vmem:[%s247_s27] sm:$0xff]  }
  0x17   : > { %640 = vmatpush3.bf16.msra.mxu0 %v684_v2 }
  0x18   : > { %641 = vmatprep.subr.bf16.mxu0 %v716_v0 }
  0x1b   : > { %642 = vmatpush3.bf16.msra.mxu0 %v685_v3 }
  0x1c   : > { %643 = vmatprep.subr.bf16.mxu0 %v716_v0 }
  0x1f   : > { %644 = vmatpush3.bf16.msra.mxu0 %v686_v4 }
  0x20   : > { %645 = vmatprep.subr.bf16.mxu0 %v716_v0 }
  0x23   : > { %646 = vmatpush3.bf16.msra.mxu0 %v687_v5 }
  0x24   : > { %647 = vmatprep.subr.bf16.mxu0 %v716_v0 }
  0x27   : > { %648 = vmatpush3.bf16.msra.mxu0 %v688_v6 }
  0x28   : > { %649 = vmatprep.subr.bf16.mxu0 %v716_v0 }
  0x2b   : > { %650 = vmatpush3.bf16.msra.mxu0 %v689_v7 }
  0x2c   : > { %651 = vmatprep.subr.bf16.mxu0 %v716_v0 }
  0x2f   : > { %652 = vmatpush3.bf16.msra.mxu0 %v690_v8 }
  0x32   : > { %654 = vmatmul.mubr.bf16.vlgmr.msra.gmra.mrb[0].mxu0 %v691_v9 }
 0x105   : > { %v381_v10 = vpop.f32.mrb[0].mxu0 }
 0x106   : > { %398 = vadd.xlane.f32.xlu0 %v381_v10  ;;  %v655_v11 = vpop.f32.mrb[1].mxu0  ;;  %v402_v12 = vmul.f32 %v381_v10, %v381_v10 }
 0x107   : > { %v384_v13 = vpop.f32.mrb[2].mxu0 }
 0x108   : > { %v626_v14 = vpack.c.bf16 %v384_v13, %v381_v10  ;;  %404 = vadd.xlane.f32.xlu1 %v402_v12  ;;  %v656_v15 = vpop.f32.mrb[3].mxu0  ;;  %v403_v16 = vmul.f32 %v384_v13, %v384_v13 }
 0x10a   : > { %627 = vst [vmem:[%s263_s30] sm:$0xff] %v626_v14   ;;  %400 = vadd.xlane.f32.xlu0 %v384_v13 }
 0x10c   : > { %406 = vadd.xlane.f32.xlu1 %v403_v16 }
 0x193   : > { %v399_v17 = vpop.xlane.xlu0 %398  ;;  %411 = sbr.rel (%p612_p5) target bundleno = 411 (0x19b), region = 32 }
 0x194   : > { %413 = vst.msk [vmem:[%s828_s3] sm:$0xff] (!%p612_p5), %vm412_vm1, %v399_v17 }
 0x195   : > { %v405_v18 = vpop.xlane.xlu1 %404 }
 0x196   : > { %415 = vst.msk [vmem:[%s829_s4] sm:$0xff] (!%p612_p5), %vm412_vm1, %v405_v18 }
 0x197   : > { %v401_v19 = vpop.xlane.xlu0 %400 }
 0x198   : > { %414 = vst.msk [vmem:[%s828_s3 + $0x8] sm:$0xff] (!%p612_p5), %vm412_vm1, %v401_v19 }
 0x199   : > { %v407_v20 = vpop.xlane.xlu1 %406 }
 0x19a   : > { %416 = vst.msk [vmem:[%s829_s4 + $0x8] sm:$0xff] %vm412_vm1, %v407_v20 }
 0x19b PF: > { %p613_p6 = scmp.le.s32.totalorder %s706_s15, 0 }
 0x19c   : > { %v421_v21 = vld [vmem:[%s828_s3] sm:$0xff] (!%p613_p6)  ;;  %vm425_vm2 = vcmask (!%p613_p6), 7168  }
 0x19d   : > { %420 = sbr.rel (%p613_p6) target bundleno = 421 (0x1a5), region = 36  ;;  %v423_v24 = vadd.f32 (!%p613_p6), %v421_v21, %v399_v17 }
 0x19e   : > { %v428_v23 = vld [vmem:[%s829_s4] sm:$0xff] (!%p613_p6) }
 0x19f   : > { %v430_v26 = vadd.f32 (!%p613_p6), %v428_v23, %v405_v18  ;;  %426 = vst.msk [vmem:[%s828_s3] sm:$0xff] (!%p613_p6), %vm425_vm2, %v423_v24 }
 0x1a0   : > { %v422_v22 = vld [vmem:[%s828_s3 + $0x8] sm:$0xff] (!%p613_p6) }
 0x1a1   : > { %v424_v25 = vadd.f32 (!%p613_p6), %v422_v22, %v401_v19  ;;  %v429_v27 = vld [vmem:[%s829_s4 + $0x8] sm:$0xff] (!%p613_p6)  ;;  %432 = vst.msk [vmem:[%s829_s4] sm:$0xff] (!%p613_p6), %vm425_vm2, %v430_v26 }
 0x1a2   : > { %v431_v28 = vadd.f32 (!%p613_p6), %v429_v27, %v407_v20 }
 0x1a3   : > { %427 = vst.msk [vmem:[%s828_s3 + $0x8] sm:$0xff] (!%p613_p6), %vm425_vm2, %v424_v25 }
 0x1a4   : > { %433 = vst.msk [vmem:[%s829_s4 + $0x8] sm:$0xff] %vm425_vm2, %v431_v28 }
 0x1a5 PF: > { %s15_s17 = sadd.s32 1, %s714_s17   ;;  %s830_s15 = smov %s710_s16 }
 0x1a6   : > { %p12_p7 = scmp.ge.s32.totalorder %s15_s17, 6   ;;  %s831_s16 = smov %s833_s18 }
 0x1a8   :  { %14 = sbr.rel (!%p12_p7) target bundleno = 2 (0x2), region = 93 }

// kernel: generator_forward.8
= control target key start
LH: loop header
LB: loop body
LE: loop exit
PB: predicated region body
PF: predicated region fallthrough
CT: control target
= control target key end

     0   :  { %s803_s15 = smov 0   ;;  %s805_s16 = smov 0   ;;  %s868_s0 = inlined_call_operand.vmem [shape: bf16[4,8,64], index: 0, kind: input, shape index: {}]   ;;  %s869_s1 = inlined_call_operand.vmem [shape: bf16[4,64,512], index: 1, kind: input, shape index: {}]   ;;  %s870_s2 = inlined_call_operand.vmem [shape: bf16[4,8,512], index: 2, kind: output, shape index: {0}]   ;;  %s871_s3 = inlined_call_operand.vmem [shape: f32[1,8,1], index: 3, kind: output, shape index: {1}]   ;;  %s872_s4 = inlined_call_operand.vmem [shape: f32[1,8,1], index: 4, kind: output, shape index: {2}]  }
   0x1   :  { %s807_s17 = smov 0  }
   0x2 LB: > { %s24_s18 = sadd.s32 1, %s771_s16  ;;  %p668_p0 = scmp.ge.s32.totalorder %s775_s17, 1  ;;  %s775_s17 = sphi %s807_s17, %s15_s17   ;;  %s771_s16 = sphi %s805_s16, %s874_s16   ;;  %s767_s15 = sphi %s803_s15, %s873_s15  }
   0x3   : > { %p25_p1 = scmp.ge.s32.totalorder %s24_s18, 4  ;;  %p197_p2 = scmp.lt.s32.totalorder %s775_s17, 5 }
   0x5   : > { %s876_s18 = smov (%p25_p1, %s24_s18), 0  ;;  %p198_p3 = pnand %p668_p0, %p197_p2 }
   0x6   : > { %p243_p4 = scmp.lt.s32.totalorder (!%p198_p3), %s767_s15, 3  ;;  %v777_v0 = vmov (!%p198_p3), 0   ;;  %vm373_vm0 = vcmask (!%p198_p3), 523264   ;;  %p694_p5 = scmp.ne.s32.totalorder (!%p198_p3), %s767_s15, 0 }
   0x7   : > { %201 = sbr.rel (%p198_p3) target bundleno = 411 (0x19b), region = 28  ;;  %409 = vmatprep.mubr.bf16.mxu0 (!%p198_p3), %v777_v0  ;;  %450 = vmatprep.mubr.bf16.mxu1 (!%p198_p3), %v777_v0 }
   0xe   : > { %s825_s19 = scalar_select %p243_p4, %s767_s15, 3 }
   0xf   : > { %vm495_vm1 = vcmask (!%p694_p5), 7168  }
  0x10   : > { %s700_s20 = sshll.u32 %s825_s19, 7  ;;  %s669_s24 = sshll.u32 %s825_s19, 2 }
  0x11   : > { %s255_s23 = scalar_lea.vmem %s869_s1, %s700_s20  ;;  %s246_s27 = scalar_lea.vmem %s868_s0, %s669_s24 }
  0x12   : > { %v729_v1 = vld [vmem:[%s255_s23 + $0x4] ss:$16 sps:$4 sm:$0xff]   ;;  %v731_v2 = vld [vmem:[%s255_s23 + $0xc] ss:$16 sps:$4 sm:$0xff]   ;;  %v733_v3 = vld [vmem:[%s255_s23] ss:$16 sps:$4 sm:$0xff]  }
  0x13   : > { %377 = vmatprep.subr.bf16.mxu0 %v729_v1  ;;  %v734_v4 = vld [vmem:[%s255_s23 + $0x8] ss:$16 sps:$4 sm:$0xff]   ;;  %418 = vmatprep.subr.bf16.mxu1 %v731_v2  ;;  %v735_v5 = vld [vmem:[%s255_s23 + $0x24] ss:$16 sps:$4 sm:$0xff]   ;;  %v737_v6 = vld [vmem:[%s255_s23 + $0x2c] ss:$16 sps:$4 sm:$0xff]  }
  0x14   : > { %378 = vmatpush1.bf16.msra.mxu0 %v733_v3  ;;  %419 = vmatpush1.bf16.msra.mxu1 %v734_v4  ;;  %v739_v7 = vld [vmem:[%s255_s23 + $0x20] ss:$16 sps:$4 sm:$0xff]   ;;  %v740_v8 = vld [vmem:[%s255_s23 + $0x28] ss:$16 sps:$4 sm:$0xff]   ;;  %v741_v9 = vld [vmem:[%s255_s23 + $0x44] ss:$16 sps:$4 sm:$0xff]  }
  0x15   : > { %379 = vmatprep.subr.bf16.mxu0 %v735_v5  ;;  %420 = vmatprep.subr.bf16.mxu1 %v737_v6  ;;  %v743_v10 = vld [vmem:[%s255_s23 + $0x4c] ss:$16 sps:$4 sm:$0xff]   ;;  %v745_v11 = vld [vmem:[%s255_s23 + $0x40] ss:$16 sps:$4 sm:$0xff]   ;;  %v746_v12 = vld [vmem:[%s255_s23 + $0x48] ss:$16 sps:$4 sm:$0xff]  }
  0x16   : > { %v747_v13 = vld [vmem:[%s255_s23 + $0x64] ss:$16 sps:$4 sm:$0xff]   ;;  %v749_v14 = vld [vmem:[%s255_s23 + $0x6c] ss:$16 sps:$4 sm:$0xff]   ;;  %v751_v15 = vld [vmem:[%s255_s23 + $0x60] ss:$16 sps:$4 sm:$0xff]  }
  0x17   : > { %v752_v16 = vld [vmem:[%s255_s23 + $0x68] ss:$16 sps:$4 sm:$0xff]   ;;  %v276_v17 = vld [vmem:[%s246_s27] sm:$0xf]  ;;  %s701_s28 = sshll.u32 %s825_s19, 4 }
  0x18   : > { %380 = vmatpush1.bf16.msra.mxu0 %v739_v7  ;;  %421 = vmatpush1.bf16.msra.mxu1 %v740_v8  ;;  %s265_s5 = scalar_lea.vmem %s870_s2, %s701_s28 }
  0x19   : > { %381 = vmatprep.subr.bf16.mxu0 %v741_v9  ;;  %422 = vmatprep.subr.bf16.mxu1 %v743_v10 }
  0x1c   : > { %382 = vmatpush1.bf16.msra.mxu0 %v745_v11  ;;  %423 = vmatpush1.bf16.msra.mxu1 %v746_v12 }
  0x1d   : > { %383 = vmatprep.subr.bf16.mxu0 %v747_v13  ;;  %424 = vmatprep.subr.bf16.mxu1 %v749_v14 }
  0x20   : > { %384 = vmatpush1.bf16.msra.mxu0 %v751_v15  ;;  %425 = vmatpush1.bf16.msra.mxu1 %v752_v16 }
  0x23   : > { %690 = vmatmul.mubr.msk.bf16.vlgmr.msra.gmra.mrb[0].mxu0 %vm373_vm0, %v276_v17  ;;  %691 = vmatmul.mubr.msk.bf16.vlgmr.msra.gmra.mrb[0].mxu1 %vm373_vm0, %v276_v17 }
  0xf6   : > { %v411_v18 = vpop.f32.mrb[0].mxu0  ;;  %v452_v19 = vpop.f32.mrb[0].mxu1 }
  0xf7   : > { %v482_v20 = vmul.f32 %v411_v18, %v411_v18  ;;  %v484_v21 = vmul.f32 %v452_v19, %v452_v19  ;;  %v413_v22 = vpop.f32.mrb[1].mxu0  ;;  %v454_v23 = vpop.f32.mrb[1].mxu1 }
  0xf8   : > { %v702_v24 = vpack.c.bf16 %v413_v22, %v411_v18  ;;  %v477_v25 = vadd.f32 %v413_v22, %v411_v18  ;;  %v483_v26 = vmul.f32 %v413_v22, %v413_v22  ;;  %v703_v27 = vpack.c.bf16 %v454_v23, %v452_v19  ;;  %v415_v28 = vpop.f32.mrb[2].mxu0  ;;  %v456_v29 = vpop.f32.mrb[2].mxu1 }
  0xf9   : > { %v416_v30 = vpop.f32.mrb[3].mxu0  ;;  %v457_v31 = vpop.f32.mrb[3].mxu1  ;;  %v485_v35 = vmul.f32 %v454_v23, %v454_v23 }
  0xfa   : > { %475 = vst [vmem:[%s265_s5] sm:$0xff] %v702_v24  ;;  %476 = vst [vmem:[%s265_s5 + $0x8] sm:$0xff] %v703_v27  ;;  %v478_v32 = vadd.f32 %v477_v25, %v452_v19  ;;  %v486_v33 = vadd.f32 %v483_v26, %v482_v20 }
  0xfc   : > { %v479_v34 = vadd.f32 %v478_v32, %v454_v23  ;;  %v487_v36 = vadd.f32 %v486_v33, %v484_v21 }
  0xfe   : > { %480 = vadd.xlane.f32.xlu0 %v479_v34  ;;  %v488_v37 = vadd.f32 %v487_v36, %v485_v35 }
 0x102   : > { %489 = vadd.xlane.f32.xlu0 %v488_v37 }
 0x189   : > { %494 = sbr.rel (%p694_p5) target bundleno = 401 (0x191), region = 32 }
 0x18b   : > { %v481_v38 = vpop.xlane.xlu0 %480 }
 0x18c   : > { %496 = vst.msk [vmem:[%s871_s3] sm:$0xff] (!%p694_p5), %vm495_vm1, %v481_v38 }
 0x18f   : > { %v490_v39 = vpop.xlane.xlu0 %489 }
 0x190   : > { %497 = vst.msk [vmem:[%s872_s4] sm:$0xff] %vm495_vm1, %v490_v39 }
 0x191 PF: > { %p695_p6 = scmp.le.s32.totalorder %s767_s15, 0 }
 0x192   : > { %vm504_vm2 = vcmask (!%p695_p6), 7168  }
 0x193   : > { %501 = sbr.rel (%p695_p6) target bundleno = 411 (0x19b), region = 36 }
 0x194   : > { %v502_v40 = vld [vmem:[%s871_s3] sm:$0xff] (!%p695_p6) }
 0x195   : > { %v503_v42 = vadd.f32 (!%p695_p6), %v502_v40, %v481_v38 }
 0x197   : > { %v506_v41 = vld [vmem:[%s872_s4] sm:$0xff] (!%p695_p6)  ;;  %505 = vst.msk [vmem:[%s871_s3] sm:$0xff] (!%p695_p6), %vm504_vm2, %v503_v42 }
 0x198   : > { %v507_v43 = vadd.f32 (!%p695_p6), %v506_v41, %v490_v39 }
 0x19a   : > { %508 = vst.msk [vmem:[%s872_s4] sm:$0xff] %vm504_vm2, %v507_v43 }
 0x19b PF: > { %s15_s17 = sadd.s32 1, %s775_s17   ;;  %s873_s15 = smov %s771_s16 }
 0x19c   : > { %p12_p7 = scmp.ge.s32.totalorder %s15_s17, 6   ;;  %s874_s16 = smov %s876_s18 }
 0x19e   :  { %14 = sbr.rel (!%p12_p7) target bundleno = 2 (0x2), region = 93 }

// kernel: generator_forward.9
= control target key start
LH: loop header
LB: loop body
LE: loop exit
PB: predicated region body
PF: predicated region fallthrough
CT: control target
= control target key end

     0   :  { %s1032_s9 = smov 0   ;;  %s1034_s10 = smov 0   ;;  %s1143_s0 = inlined_call_operand.vmem [shape: bf16[4,3,32], index: 0, kind: input, shape index: {}]   ;;  %s1144_s1 = inlined_call_operand.vmem [shape: bf16[4,32,2048], index: 1, kind: input, shape index: {}]   ;;  %s1145_s2 = inlined_call_operand.vmem [shape: f32[4,3,2048], index: 2, kind: output, shape index: {}]  }
   0x1   :  { %s1036_s11 = smov 0  }
   0x2 LB: > { %s21_s12 = sadd.s32 1, %s1010_s10  ;;  %p885_p0 = scmp.ge.s32.totalorder %s1014_s11, 1  ;;  %s1014_s11 = sphi %s1036_s11, %s12_s11   ;;  %s1010_s10 = sphi %s1034_s10, %s1147_s10   ;;  %s1006_s9 = sphi %s1032_s9, %s1146_s9  }
   0x3   : > { %p22_p1 = scmp.ge.s32.totalorder %s21_s12, 4  ;;  %p142_p2 = scmp.lt.s32.totalorder %s1014_s11, 5 }
   0x5   : > { %s1149_s12 = smov (%p22_p1, %s21_s12), 0  ;;  %p143_p3 = pnand %p885_p0, %p142_p2 }
   0x6   : > { %p176_p4 = scmp.lt.s32.totalorder (!%p143_p3), %s1006_s9, 3  ;;  %v1016_v0 = vmov (!%p143_p3), 0   ;;  %vm394_vm0 = vcmask (!%p143_p3), 261120  }
   0x7   : > { %146 = sbr.rel (%p143_p3) target bundleno = 282 (0x11a), region = 28  ;;  %430 = vmatprep.mubr.bf16.mxu0 (!%p143_p3), %v1016_v0  ;;  %471 = vmatprep.mubr.bf16.mxu1 (!%p143_p3), %v1016_v0 }
   0xe   : > { %s1151_s9 = smov (!%p176_p4, %s1006_s9), 3 }
   0xf   : > { %s933_s13 = sshll.u32 %s1151_s9, 8  ;;  %s886_s17 = sshll.u32 %s1151_s9, 1 }
  0x10   : > { %s1058_s16 = scalar_lea.vmem %s1144_s1, %s933_s13  ;;  %s179_s20 = scalar_lea.vmem %s1143_s0, %s886_s17 }
  0x11   : > { %v202_v1 = vld [vmem:[%s1058_s16] sm:$0xff]  ;;  %v203_v3 = vld [vmem:[%s1058_s16 + $0x8] sm:$0xff]  ;;  %v204_v15 = vld [vmem:[%s1058_s16 + $0x10] sm:$0xff]  ;;  %s934_s21 = sshll.u32 %s1151_s9, 6 }
  0x12   : > { %v210_v2 = vld [vmem:[%s1058_s16 + $0x40] sm:$0xff]  ;;  %v211_v5 = vld [vmem:[%s1058_s16 + $0x48] sm:$0xff]  ;;  %v212_v16 = vld [vmem:[%s1058_s16 + $0x50] sm:$0xff]  ;;  %s1124_s24 = scalar_lea.vmem %s1145_s2, %s934_s21 }
  0x13   : > { %v892_v4 = vcombine.high %v202_v1, %v210_v2  ;;  %v891_v6 = vcombine.low %v202_v1, %v210_v2  ;;  %v218_v7 = vld [vmem:[%s1058_s16 + $0x80] sm:$0xff]  ;;  %v894_v9 = vcombine.high %v203_v3, %v211_v5  ;;  %v893_v10 = vcombine.low %v203_v3, %v211_v5  ;;  %v219_v12 = vld [vmem:[%s1058_s16 + $0x88] sm:$0xff]  ;;  %v205_v17 = vld [vmem:[%s1058_s16 + $0x18] sm:$0xff] }
  0x14   : > { %v226_v8 = vld [vmem:[%s1058_s16 + $0xc0] sm:$0xff]  ;;  %v227_v13 = vld [vmem:[%s1058_s16 + $0xc8] sm:$0xff]  ;;  %v213_v19 = vld [vmem:[%s1058_s16 + $0x58] sm:$0xff]  ;;  %v896_v21 = vcombine.high %v204_v15, %v212_v16  ;;  %v895_v28 = vcombine.low %v204_v15, %v212_v16 }
  0x15   : > { %v908_v11 = vcombine.high %v218_v7, %v226_v8  ;;  %398 = vmatprep.subr.bf16.mxu0 %v892_v4  ;;  %v910_v14 = vcombine.high %v219_v12, %v227_v13  ;;  %439 = vmatprep.subr.bf16.mxu1 %v894_v9  ;;  %v907_v18 = vcombine.low %v218_v7, %v226_v8  ;;  %v220_v23 = vld [vmem:[%s1058_s16 + $0x90] sm:$0xff]  ;;  %v221_v25 = vld [vmem:[%s1058_s16 + $0x98] sm:$0xff]  ;;  %v1080_v27 = vld [vmem:[%s179_s20] sm:$0x3] }
  0x16   : > { %399 = vmatpush1.bf16.msra.mxu0 %v891_v6  ;;  %440 = vmatpush1.bf16.msra.mxu1 %v893_v10  ;;  %v909_v20 = vcombine.low %v219_v12, %v227_v13  ;;  %v898_v22 = vcombine.high %v205_v17, %v213_v19  ;;  %v228_v24 = vld [vmem:[%s1058_s16 + $0xd0] sm:$0xff]  ;;  %v229_v26 = vld [vmem:[%s1058_s16 + $0xd8] sm:$0xff]  ;;  %v897_v29 = vcombine.low %v205_v17, %v213_v19  ;;  %v206_v32 = vld [vmem:[%s1058_s16 + $0x20] sm:$0xff] }
  0x17   : > { %400 = vmatprep.subr.bf16.mxu0 %v908_v11  ;;  %441 = vmatprep.subr.bf16.mxu1 %v910_v14  ;;  %v912_v30 = vcombine.high %v220_v23, %v228_v24  ;;  %v914_v31 = vcombine.high %v221_v25, %v229_v26  ;;  %v214_v33 = vld [vmem:[%s1058_s16 + $0x60] sm:$0xff]  ;;  %v207_v34 = vld [vmem:[%s1058_s16 + $0x28] sm:$0xff]  ;;  %v911_v36 = vcombine.low %v220_v23, %v228_v24  ;;  %v208_v48 = vld [vmem:[%s1058_s16 + $0x30] sm:$0xff] }
  0x18   : > { %v215_v35 = vld [vmem:[%s1058_s16 + $0x68] sm:$0xff]  ;;  %v913_v37 = vcombine.low %v221_v25, %v229_v26  ;;  %v900_v38 = vcombine.high %v206_v32, %v214_v33  ;;  %v222_v40 = vld [vmem:[%s1058_s16 + $0xa0] sm:$0xff]  ;;  %v899_v44 = vcombine.low %v206_v32, %v214_v33  ;;  %v216_v49 = vld [vmem:[%s1058_s16 + $0x70] sm:$0xff] }
  0x19   : > { %v902_v39 = vcombine.high %v207_v34, %v215_v35  ;;  %v230_v41 = vld [vmem:[%s1058_s16 + $0xe0] sm:$0xff]  ;;  %v223_v42 = vld [vmem:[%s1058_s16 + $0xa8] sm:$0xff]  ;;  %v901_v45 = vcombine.low %v207_v34, %v215_v35  ;;  %v209_v50 = vld [vmem:[%s1058_s16 + $0x38] sm:$0xff]  ;;  %v904_v54 = vcombine.high %v208_v48, %v216_v49  ;;  %v903_v60 = vcombine.low %v208_v48, %v216_v49 }
  0x1a   : > { %401 = vmatpush1.bf16.msra.mxu0 %v907_v18  ;;  %442 = vmatpush1.bf16.msra.mxu1 %v909_v20  ;;  %v231_v43 = vld [vmem:[%s1058_s16 + $0xe8] sm:$0xff]  ;;  %v916_v46 = vcombine.high %v222_v40, %v230_v41  ;;  %v217_v51 = vld [vmem:[%s1058_s16 + $0x78] sm:$0xff]  ;;  %v915_v52 = vcombine.low %v222_v40, %v230_v41  ;;  %v224_v56 = vld [vmem:[%s1058_s16 + $0xb0] sm:$0xff] }
  0x1b   : > { %480 = vmatprep.subr.bf16.mxu0 %v896_v21  ;;  %521 = vmatprep.subr.bf16.mxu1 %v898_v22  ;;  %v918_v47 = vcombine.high %v223_v42, %v231_v43  ;;  %v917_v53 = vcombine.low %v223_v42, %v231_v43  ;;  %v906_v55 = vcombine.high %v209_v50, %v217_v51  ;;  %v232_v57 = vld [vmem:[%s1058_s16 + $0xf0] sm:$0xff]  ;;  %v225_v58 = vld [vmem:[%s1058_s16 + $0xb8] sm:$0xff] }
  0x1c   : > { %v233_v59 = vld [vmem:[%s1058_s16 + $0xf8] sm:$0xff]  ;;  %v905_v61 = vcombine.low %v209_v50, %v217_v51  ;;  %v920_v62 = vcombine.high %v224_v56, %v232_v57  ;;  %v919_v1 = vcombine.low %v224_v56, %v232_v57 }
  0x1d   : > { %923 = vmatmul.mubr.msk.bf16.vlgmr.msra.gmra.mrb[0].mxu0 %vm394_vm0, %v1080_v27  ;;  %924 = vmatmul.mubr.msk.bf16.vlgmr.msra.gmra.mrb[0].mxu1 %vm394_vm0, %v1080_v27  ;;  %v922_v63 = vcombine.high %v225_v58, %v233_v59  ;;  %v921_v2 = vcombine.low %v225_v58, %v233_v59 }
  0x1e   : > { %481 = vmatpush1.bf16.msra.mxu0 %v895_v28  ;;  %522 = vmatpush1.bf16.msra.mxu1 %v897_v29 }
  0x1f   : > { %482 = vmatprep.subr.bf16.mxu0 %v912_v30  ;;  %523 = vmatprep.subr.bf16.mxu1 %v914_v31 }
  0x20   : > { %512 = vmatprep.mubr.bf16.mxu0 %v1016_v0  ;;  %553 = vmatprep.mubr.bf16.mxu1 %v1016_v0 }
  0x22   : > { %483 = vmatpush1.bf16.msra.mxu0 %v911_v36  ;;  %524 = vmatpush1.bf16.msra.mxu1 %v913_v37 }
  0x23   : > { %562 = vmatprep.subr.bf16.mxu0 %v900_v38  ;;  %603 = vmatprep.subr.bf16.mxu1 %v902_v39 }
  0x25   : > { %925 = vmatmul.mubr.msk.bf16.vlgmr.msra.gmra.mrb[4].mxu0 %vm394_vm0, %v1080_v27  ;;  %926 = vmatmul.mubr.msk.bf16.vlgmr.msra.gmra.mrb[4].mxu1 %vm394_vm0, %v1080_v27 }
  0x26   : > { %563 = vmatpush1.bf16.msra.mxu0 %v899_v44  ;;  %604 = vmatpush1.bf16.msra.mxu1 %v901_v45 }
  0x27   : > { %564 = vmatprep.subr.bf16.mxu0 %v916_v46  ;;  %605 = vmatprep.subr.bf16.mxu1 %v918_v47 }
  0x28   : > { %594 = vmatprep.mubr.bf16.mxu0 %v1016_v0  ;;  %635 = vmatprep.mubr.bf16.mxu1 %v1016_v0 }
  0x2a   : > { %565 = vmatpush1.bf16.msra.mxu0 %v915_v52  ;;  %606 = vmatpush1.bf16.msra.mxu1 %v917_v53 }
  0x2b   : > { %644 = vmatprep.subr.bf16.mxu0 %v904_v54  ;;  %685 = vmatprep.subr.bf16.mxu1 %v906_v55 }
  0x2d   : > { %927 = vmatmul.mubr.msk.bf16.vlgmr.msra.gmra.mrb[8].mxu0 %vm394_vm0, %v1080_v27  ;;  %928 = vmatmul.mubr.msk.bf16.vlgmr.msra.gmra.mrb[8].mxu1 %vm394_vm0, %v1080_v27 }
  0x2e   : > { %645 = vmatpush1.bf16.msra.mxu0 %v903_v60  ;;  %686 = vmatpush1.bf16.msra.mxu1 %v905_v61 }
  0x2f   : > { %646 = vmatprep.subr.bf16.mxu0 %v920_v62  ;;  %687 = vmatprep.subr.bf16.mxu1 %v922_v63 }
  0x30   : > { %676 = vmatprep.mubr.bf16.mxu0 %v1016_v0  ;;  %717 = vmatprep.mubr.bf16.mxu1 %v1016_v0 }
  0x32   : > { %647 = vmatpush1.bf16.msra.mxu0 %v919_v1  ;;  %688 = vmatpush1.bf16.msra.mxu1 %v921_v2 }
  0x35   : > { %929 = vmatmul.mubr.msk.bf16.vlgmr.msra.gmra.mrb[12].mxu0 %vm394_vm0, %v1080_v27  ;;  %930 = vmatmul.mubr.msk.bf16.vlgmr.msra.gmra.mrb[12].mxu1 %vm394_vm0, %v1080_v27 }
  0xf0   : > { %v432_v3 = vpop.f32.mrb[0].mxu0  ;;  %v473_v4 = vpop.f32.mrb[0].mxu1 }
  0xf1   : > { %960 = vtanh.f32 %v432_v3  ;;  %v434_v5 = vpop.f32.mrb[1].mxu0  ;;  %v475_v6 = vpop.f32.mrb[1].mxu1 }
  0xf2   : > { %962 = vtanh.f32 %v473_v4  ;;  %v436_v7 = vpop.f32.mrb[2].mxu0  ;;  %v477_v8 = vpop.f32.mrb[2].mxu1 }
  0xf3   : > { %964 = vtanh.f32 %v434_v5  ;;  %v437_v9 = vpop.f32.mrb[3].mxu0  ;;  %v478_v0 = vpop.f32.mrb[3].mxu1 }
  0xf4   : > { %966 = vtanh.f32 %v475_v6 }
  0xf8   : > { %v514_v10 = vpop.f32.mrb[4].mxu0  ;;  %v555_v11 = vpop.f32.mrb[4].mxu1 }
  0xf9   : > { %968 = vtanh.f32 %v514_v10  ;;  %v516_v12 = vpop.f32.mrb[5].mxu0  ;;  %v557_v13 = vpop.f32.mrb[5].mxu1 }
  0xfa   : > { %970 = vtanh.f32 %v555_v11  ;;  %v518_v14 = vpop.f32.mrb[6].mxu0  ;;  %v559_v16 = vpop.f32.mrb[6].mxu1 }
  0xfb   : > { %v961_v15 = vpop.eup %960  ;;  %972 = vtanh.f32 %v516_v12  ;;  %v519_v17 = vpop.f32.mrb[7].mxu0 }
  0xfc   : > { %v963_v18 = vpop.eup %962  ;;  %974 = vtanh.f32 %v557_v13  ;;  %v560_v19 = vpop.f32.mrb[7].mxu1 }
  0xfd   : > { %v965_v20 = vpop.eup %964 }
  0xfe   : > { %v967_v21 = vpop.eup %966  ;;  %v758_v22 = vcombine.low %v961_v15, %v965_v20 }
  0xff   : > { %v759_v23 = vcombine.low %v963_v18, %v967_v21 }
 0x100   : > { %774 = vst [vmem:[%s1124_s24] sm:$0x77] %v758_v22  ;;  %v596_v24 = vpop.f32.mrb[8].mxu0  ;;  %v637_v25 = vpop.f32.mrb[8].mxu1 }
 0x101   : > { %775 = vst [vmem:[%s1124_s24 + $0x8] sm:$0x77] %v759_v23  ;;  %976 = vtanh.f32 %v596_v24  ;;  %v598_v26 = vpop.f32.mrb[9].mxu0  ;;  %v639_v27 = vpop.f32.mrb[9].mxu1 }
 0x102   : > { %978 = vtanh.f32 %v637_v25  ;;  %v600_v28 = vpop.f32.mrb[10].mxu0  ;;  %v641_v30 = vpop.f32.mrb[10].mxu1 }
 0x103   : > { %v969_v29 = vpop.eup %968  ;;  %980 = vtanh.f32 %v598_v26  ;;  %v601_v31 = vpop.f32.mrb[11].mxu0 }
 0x104   : > { %v971_v32 = vpop.eup %970  ;;  %982 = vtanh.f32 %v639_v27  ;;  %v642_v33 = vpop.f32.mrb[11].mxu1 }
 0x105   : > { %v973_v34 = vpop.eup %972 }
 0x106   : > { %v975_v35 = vpop.eup %974  ;;  %v760_v36 = vcombine.low %v969_v29, %v973_v34 }
 0x107   : > { %v761_v37 = vcombine.low %v971_v32, %v975_v35 }
 0x108   : > { %776 = vst [vmem:[%s1124_s24 + $0x10] sm:$0x77] %v760_v36  ;;  %v678_v38 = vpop.f32.mrb[12].mxu0  ;;  %v719_v39 = vpop.f32.mrb[12].mxu1 }
 0x109   : > { %777 = vst [vmem:[%s1124_s24 + $0x18] sm:$0x77] %v761_v37  ;;  %984 = vtanh.f32 %v678_v38  ;;  %v680_v40 = vpop.f32.mrb[13].mxu0  ;;  %v721_v41 = vpop.f32.mrb[13].mxu1 }
 0x10a   : > { %986 = vtanh.f32 %v719_v39  ;;  %v682_v42 = vpop.f32.mrb[14].mxu0  ;;  %v723_v44 = vpop.f32.mrb[14].mxu1 }
 0x10b   : > { %v977_v43 = vpop.eup %976  ;;  %988 = vtanh.f32 %v680_v40  ;;  %v683_v45 = vpop.f32.mrb[15].mxu0 }
 0x10c   : > { %v979_v46 = vpop.eup %978  ;;  %990 = vtanh.f32 %v721_v41  ;;  %v724_v47 = vpop.f32.mrb[15].mxu1 }
 0x10d   : > { %v981_v48 = vpop.eup %980 }
 0x10e   : > { %v983_v49 = vpop.eup %982  ;;  %v762_v50 = vcombine.low %v977_v43, %v981_v48 }
 0x10f   : > { %v763_v51 = vcombine.low %v979_v46, %v983_v49 }
 0x110   : > { %778 = vst [vmem:[%s1124_s24 + $0x20] sm:$0x77] %v762_v50 }
 0x111   : > { %779 = vst [vmem:[%s1124_s24 + $0x28] sm:$0x77] %v763_v51 }
 0x113   : > { %v985_v52 = vpop.eup %984 }
 0x114   : > { %v987_v53 = vpop.eup %986 }
 0x115   : > { %v989_v54 = vpop.eup %988 }
 0x116   : > { %v991_v55 = vpop.eup %990  ;;  %v764_v56 = vcombine.low %v985_v52, %v989_v54 }
 0x117   : > { %v765_v57 = vcombine.low %v987_v53, %v991_v55 }
 0x118   : > { %780 = vst [vmem:[%s1124_s24 + $0x30] sm:$0x77] %v764_v56 }
 0x119   : > { %781 = vst [vmem:[%s1124_s24 + $0x38] sm:$0x77] %v765_v57 }
 0x11a PF: > { %s12_s11 = sadd.s32 1, %s1014_s11   ;;  %s1146_s9 = smov %s1010_s10 }
 0x11b   : > { %p9_p5 = scmp.ge.s32.totalorder %s12_s11, 6   ;;  %s1147_s10 = smov %s1149_s12 }
 0x11d   :  { %11 = sbr.rel (!%p9_p5) target bundleno = 2 (0x2), region = 61 }

</bundles_post_ra>
